<compile_context>
chip_gen: v5e
topology: v5e:2x2
jax: 0.10.0
libtpu: 0.0.40
codegen_flags: <defaults>
</compile_context>

<pallas_src>
import math

import jax
import jax.numpy as jnp
from jax.experimental import pallas as pl
from jax.experimental.pallas import tpu as pltpu

D_MODEL = 32
NHEAD = 4
HEAD_DIM = D_MODEL // NHEAD
DIM_FF = 64
LN_EPS = 1e-5
NEG_INF = -1e9


def _layer_norm(x, gamma, beta):
    mu = jnp.mean(x, axis=-1, keepdims=True)
    var = jnp.mean(jnp.square(x - mu), axis=-1, keepdims=True)
    return (x - mu) * jax.lax.rsqrt(var + LN_EPS) * gamma + beta


# --------------------------------------------------------------------------
# Fused kernel: WindowAttention.self_attn + residual/LN1 + FFN + residual/LN2
# for a batch of WB windows per grid step.
# --------------------------------------------------------------------------
def _encoder_layer_kernel(feat_ref, pos_ref, mask_ref,
                          wq_ref, wk_ref, wv_ref, wo_ref,
                          bq_ref, bk_ref, bv_ref, bo_ref,
                          ln1g_ref, ln1b_ref,
                          w1_ref, b1_ref, w2_ref, b2_ref,
                          ln2g_ref, ln2b_ref,
                          o_ref):
    WB, S, D = feat_ref.shape
    T = WB * S

    feat = feat_ref[...].reshape(T, D)            # v = feat (no positional enc.)
    x = feat + pos_ref[...].reshape(T, D)         # q = k = feat + pos (in-kernel)
    mask = mask_ref[...]                          # (WB, 1, S) additive key mask

    scale = 1.0 / math.sqrt(HEAD_DIM)
    acc = jnp.zeros((T, D), jnp.float32)
    for h in range(NHEAD):                        # static, small head count
        # Per-head projections from pre-split weights: no in-kernel activation
        # lane slicing, no head concatenation.
        qh = jnp.dot(x, wq_ref[h], preferred_element_type=jnp.float32) + bq_ref[h]
        kh = jnp.dot(x, wk_ref[h], preferred_element_type=jnp.float32) + bk_ref[h]
        vh = jnp.dot(feat, wv_ref[h], preferred_element_type=jnp.float32) + bv_ref[h]
        qh = qh.reshape(WB, S, HEAD_DIM) * scale
        kh = kh.reshape(WB, S, HEAD_DIM)
        vh = vh.reshape(WB, S, HEAD_DIM)

        s = jnp.einsum("wid,wjd->wij", qh, kh,
                       preferred_element_type=jnp.float32) + mask      # (WB,S,S)
        s = s - jnp.max(s, axis=-1, keepdims=True)
        p = jnp.exp(s)
        p = p * pl.reciprocal(jnp.sum(p, axis=-1, keepdims=True), approx=True)
        oh = jnp.einsum("wij,wjd->wid", p, vh,
                        preferred_element_type=jnp.float32)            # (WB,S,hd)
        acc = acc + jnp.dot(oh.reshape(T, HEAD_DIM), wo_ref[h],
                            preferred_element_type=jnp.float32)
    attn = acc + bo_ref[...]                      # (T, D) self_attn output

    # src + dropout1(src2) ; norm1    (dropout = identity at inference)
    y = feat + attn
    y = _layer_norm(y, ln1g_ref[...], ln1b_ref[...])

    # linear2(relu(linear1(y)))
    hdn = jnp.maximum(
        jnp.dot(y, w1_ref[...], preferred_element_type=jnp.float32) + b1_ref[...],
        0.0)
    ff = jnp.dot(hdn, w2_ref[...], preferred_element_type=jnp.float32) + b2_ref[...]

    # src + dropout2(src2) ; norm2
    z = _layer_norm(y + ff, ln2g_ref[...], ln2b_ref[...])
    o_ref[...] = z.reshape(WB, S, D).astype(o_ref.dtype)


def fused_encoder_windows(feat3d, pos, mask_add, params, wb):
    B, S, D = feat3d.shape
    H, hd = NHEAD, HEAD_DIM

    # Static per-head weight restructuring in the wrapper (free; folded by XLA).
    wq_h = params["wq_t"].reshape(D, H, hd).transpose(1, 0, 2)   # (H, D, hd)
    wk_h = params["wk_t"].reshape(D, H, hd).transpose(1, 0, 2)
    wv_h = params["wv_t"].reshape(D, H, hd).transpose(1, 0, 2)
    wo_h = params["wo_t"].reshape(H, hd, D)                      # (H, hd, D)
    bq_h = params["bq"].reshape(H, 1, hd)
    bk_h = params["bk"].reshape(H, 1, hd)
    bv_h = params["bv"].reshape(H, 1, hd)

    win = pl.BlockSpec((wb, S, D), lambda w: (w, 0, 0))
    msk = pl.BlockSpec((wb, 1, S), lambda w: (w, 0, 0))
    c3 = lambda w: (0, 0, 0)
    c2 = lambda w: (0, 0)

    return pl.pallas_call(
        _encoder_layer_kernel,
        grid=(pl.cdiv(B, wb),),
        in_specs=[
            win, win, msk,
            pl.BlockSpec((H, D, hd), c3), pl.BlockSpec((H, D, hd), c3),
            pl.BlockSpec((H, D, hd), c3), pl.BlockSpec((H, hd, D), c3),
            pl.BlockSpec((H, 1, hd), c3), pl.BlockSpec((H, 1, hd), c3),
            pl.BlockSpec((H, 1, hd), c3), pl.BlockSpec((1, D), c2),
            pl.BlockSpec((1, D), c2), pl.BlockSpec((1, D), c2),
            pl.BlockSpec((D, DIM_FF), c2), pl.BlockSpec((1, DIM_FF), c2),
            pl.BlockSpec((DIM_FF, D), c2), pl.BlockSpec((1, D), c2),
            pl.BlockSpec((1, D), c2), pl.BlockSpec((1, D), c2),
        ],
        out_specs=win,
        out_shape=jax.ShapeDtypeStruct((B, S, D), feat3d.dtype),
        compiler_params=pltpu.CompilerParams(
            dimension_semantics=("parallel",),
            vmem_limit_bytes=32 * 1024 * 1024),
    )(feat3d, pos, mask_add,
      wq_h, wk_h, wv_h, wo_h, bq_h, bk_h, bv_h, params["bo"],
      params["ln1_g"], params["ln1_b"],
      params["w1_t"], params["b1"], params["w2_t"], params["b2"],
      params["ln2_g"], params["ln2_b"])


# --------------------------------------------------------------------------
# Plain-JAX glue (flat2window_v2 / window2flat_v2) + top-level forward
# --------------------------------------------------------------------------
def encoder_layer_forward(src, pos, inds, key_padding_mask, params,
                          max_windows_per_block=64):
    # TODO(synk): cross_att=True branch (top/bottom feature split) not implemented.
    # TODO(synk): flat2window/window2flat scatter-gather kept in plain JAX;
    # could be fused in-kernel via PrefetchScalarGridSpec + pl.Element gathers.
    B, S = key_padding_mask.shape
    D = src.shape[-1]
    feat3d = jnp.zeros((B * S, D), src.dtype).at[inds].set(src).reshape(B, S, D)
    mask_add = jnp.where(key_padding_mask, NEG_INF, 0.0).astype(jnp.float32)
    mask_add = mask_add.reshape(B, 1, S)
    # Batch windows so each grid step handles ~4k tokens (amortizes per-step
    # pipeline overhead, fits default scoped VMEM on v5e/v6e/v7x).
    wb = max(1, min(B, max_windows_per_block, max(1, 4096 // S)))
    out3d = fused_encoder_windows(feat3d, pos, mask_add, params, wb)
    return out3d.reshape(-1, D)[inds]


# --------------------------------------------------------------------------
# Pure-JAX reference (mirrors PyTorch EncoderLayer at inference) for checking
# --------------------------------------------------------------------------
def reference_forward(src, pos, inds, key_padding_mask, params):
    B, S = key_padding_mask.shape
    D = src.shape[-1]
    feat = jnp.zeros((B * S, D), src.dtype).at[inds].set(src).reshape(B, S, D)
    x = feat + pos
    q = x @ params["wq_t"] + params["bq"]
    k = x @ params["wk_t"] + params["bk"]
    v = feat @ params["wv_t"] + params["bv"]

    def split(t):
        return t.reshape(B, S, NHEAD, HEAD_DIM).transpose(0, 2, 1, 3)

    qh = split(q) / math.sqrt(HEAD_DIM)
    kh, vh = split(k), split(v)
    s = jnp.einsum("bhid,bhjd->bhij", qh, kh)
    s = s + jnp.where(key_padding_mask, NEG_INF, 0.0)[:, None, None, :]
    p = jax.nn.softmax(s, axis=-1)
    o = jnp.einsum("bhij,bhjd->bhid", p, vh)
    attn3d = o.transpose(0, 2, 1, 3).reshape(B, S, D) @ params["wo_t"] + params["bo"]
    attn_flat = attn3d.reshape(-1, D)[inds]

    y = _layer_norm(src + attn_flat, params["ln1_g"], params["ln1_b"])
    ff = (jnp.maximum(y @ params["w1_t"] + params["b1"], 0.0)
          @ params["w2_t"] + params["b2"])
    return _layer_norm(y + ff, params["ln2_g"], params["ln2_b"])


# --------------------------------------------------------------------------
# Deterministic parameter init (shapes from EncoderLayer.__init__)
# --------------------------------------------------------------------------
def init_params(key):
    ks = jax.random.split(key, 16)
    w = lambda k, shape: jax.random.normal(k, shape, jnp.float32) * 0.02
    # nn.MultiheadAttention: in_proj (3*D, D) split into q/k/v, out_proj (D, D).
    # Stored pre-transposed as (in, out) so kernels do x @ W_t directly.
    return {
        "wq_t": w(ks[0], (D_MODEL, D_MODEL)),
        "wk_t": w(ks[1], (D_MODEL, D_MODEL)),
        "wv_t": w(ks[2], (D_MODEL, D_MODEL)),
        "wo_t": w(ks[3], (D_MODEL, D_MODEL)),
        "bq": w(ks[4], (1, D_MODEL)),
        "bk": w(ks[5], (1, D_MODEL)),
        "bv": w(ks[6], (1, D_MODEL)),
        "bo": w(ks[7], (1, D_MODEL)),
        # linear1: (dim_ff, d_model), linear2: (d_model, dim_ff) — stored transposed.
        "w1_t": w(ks[8], (D_MODEL, DIM_FF)),
        "b1": w(ks[9], (1, DIM_FF)),
        "w2_t": w(ks[10], (DIM_FF, D_MODEL)),
        "b2": w(ks[11], (1, D_MODEL)),
        # LayerNorms
        "ln1_g": 1.0 + w(ks[12], (1, D_MODEL)),
        "ln1_b": w(ks[13], (1, D_MODEL)),
        "ln2_g": 1.0 + w(ks[14], (1, D_MODEL)),
        "ln2_b": w(ks[15], (1, D_MODEL)),
    }


if __name__ == "__main__":
    key = jax.random.PRNGKey(0)
    k_src, k_pos, k_par = jax.random.split(key, 3)

    B, S = 2, 8                    # num_windows, max tokens per window
    counts = [7, 5]                # real (non-padded) voxels per window
    N = sum(counts)                # total flat voxels

    src = jax.random.normal(k_src, (N, D_MODEL), jnp.float32)
    pos = jax.random.normal(k_pos, (B, S, D_MODEL), jnp.float32)

    # ind_dict / key_padding_dict for the single window group.
    inds = jnp.concatenate(
        [jnp.arange(counts[0]), jnp.arange(counts[1]) + S]).astype(jnp.int32)
    key_padding_mask = jnp.stack(
        [jnp.arange(S) >= counts[0], jnp.arange(S) >= counts[1]])  # True = pad

    params = init_params(k_par)

    out = encoder_layer_forward(src, pos, inds, key_padding_mask, params)
    out = jax.block_until_ready(out)
    ref = reference_forward(src, pos, inds, key_padding_mask, params)

    assert out.shape == (N, D_MODEL)
    assert bool(jnp.all(jnp.isfinite(out)))
    err = float(jnp.max(jnp.abs(out - ref)))
    assert err < 5e-2, f"max abs err vs reference: {err}"
    print("KERNEL_OK")
</pallas_src>

<mosaic_0001>
module attributes {stable_mosaic.version = 11 : i64} {
  func.func @_encoder_layer_kernel(%arg0: i32, %arg1: memref<2x8x32xf32, #tpu.memory_space<vmem>>, %arg2: memref<2x8x32xf32, #tpu.memory_space<vmem>>, %arg3: memref<2x1x8xf32, #tpu.memory_space<vmem>>, %arg4: memref<4x32x8xf32, #tpu.memory_space<vmem>>, %arg5: memref<4x32x8xf32, #tpu.memory_space<vmem>>, %arg6: memref<4x32x8xf32, #tpu.memory_space<vmem>>, %arg7: memref<4x8x32xf32, #tpu.memory_space<vmem>>, %arg8: memref<4x1x8xf32, #tpu.memory_space<vmem>>, %arg9: memref<4x1x8xf32, #tpu.memory_space<vmem>>, %arg10: memref<4x1x8xf32, #tpu.memory_space<vmem>>, %arg11: memref<1x32xf32, #tpu.memory_space<vmem>>, %arg12: memref<1x32xf32, #tpu.memory_space<vmem>>, %arg13: memref<1x32xf32, #tpu.memory_space<vmem>>, %arg14: memref<32x64xf32, #tpu.memory_space<vmem>>, %arg15: memref<1x64xf32, #tpu.memory_space<vmem>>, %arg16: memref<64x32xf32, #tpu.memory_space<vmem>>, %arg17: memref<1x32xf32, #tpu.memory_space<vmem>>, %arg18: memref<1x32xf32, #tpu.memory_space<vmem>>, %arg19: memref<1x32xf32, #tpu.memory_space<vmem>>, %arg20: memref<2x8x32xf32, #tpu.memory_space<vmem>>) attributes {dimension_semantics = [#tpu.dimension_semantics<parallel>], iteration_bounds = array<i64: 1>, scalar_prefetch = 0 : i64, scratch_operands = 0 : i64, tpu.core_type = #tpu.core_type<tc>, window_params = [{transform_indices = @transform_0, window_bounds = array<i64: 2, 8, 32>}, {transform_indices = @transform_1, window_bounds = array<i64: 2, 8, 32>}, {transform_indices = @transform_2, window_bounds = array<i64: 2, 1, 8>}, {pipeline_mode = #tpu.pipeline_mode<synchronous>, transform_indices = @transform_3, window_bounds = array<i64: 4, 32, 8>}, {pipeline_mode = #tpu.pipeline_mode<synchronous>, transform_indices = @transform_4, window_bounds = array<i64: 4, 32, 8>}, {pipeline_mode = #tpu.pipeline_mode<synchronous>, transform_indices = @transform_5, window_bounds = array<i64: 4, 32, 8>}, {pipeline_mode = #tpu.pipeline_mode<synchronous>, transform_indices = @transform_6, window_bounds = array<i64: 4, 8, 32>}, {pipeline_mode = #tpu.pipeline_mode<synchronous>, transform_indices = @transform_7, window_bounds = array<i64: 4, 1, 8>}, {pipeline_mode = #tpu.pipeline_mode<synchronous>, transform_indices = @transform_8, window_bounds = array<i64: 4, 1, 8>}, {pipeline_mode = #tpu.pipeline_mode<synchronous>, transform_indices = @transform_9, window_bounds = array<i64: 4, 1, 8>}, {pipeline_mode = #tpu.pipeline_mode<synchronous>, transform_indices = @transform_10, window_bounds = array<i64: 1, 32>}, {pipeline_mode = #tpu.pipeline_mode<synchronous>, transform_indices = @transform_11, window_bounds = array<i64: 1, 32>}, {pipeline_mode = #tpu.pipeline_mode<synchronous>, transform_indices = @transform_12, window_bounds = array<i64: 1, 32>}, {pipeline_mode = #tpu.pipeline_mode<synchronous>, transform_indices = @transform_13, window_bounds = array<i64: 32, 64>}, {pipeline_mode = #tpu.pipeline_mode<synchronous>, transform_indices = @transform_14, window_bounds = array<i64: 1, 64>}, {pipeline_mode = #tpu.pipeline_mode<synchronous>, transform_indices = @transform_15, window_bounds = array<i64: 64, 32>}, {pipeline_mode = #tpu.pipeline_mode<synchronous>, transform_indices = @transform_16, window_bounds = array<i64: 1, 32>}, {pipeline_mode = #tpu.pipeline_mode<synchronous>, transform_indices = @transform_17, window_bounds = array<i64: 1, 32>}, {pipeline_mode = #tpu.pipeline_mode<synchronous>, transform_indices = @transform_18, window_bounds = array<i64: 1, 32>}, {transform_indices = @transform_19, window_bounds = array<i64: 2, 8, 32>}]} {
    %c0 = arith.constant 0 : index
    %c0_0 = arith.constant 0 : index
    %c0_1 = arith.constant 0 : index
    %0 = vector.load %arg1[%c0, %c0_0, %c0_1] : memref<2x8x32xf32, #tpu.memory_space<vmem>>, vector<2x8x32xf32>
    %1 = vector.shape_cast %0 : vector<2x8x32xf32> to vector<16x32xf32>
    %c0_2 = arith.constant 0 : index
    %c0_3 = arith.constant 0 : index
    %c0_4 = arith.constant 0 : index
    %2 = vector.load %arg2[%c0_2, %c0_3, %c0_4] : memref<2x8x32xf32, #tpu.memory_space<vmem>>, vector<2x8x32xf32>
    %3 = vector.shape_cast %2 : vector<2x8x32xf32> to vector<16x32xf32>
    %4 = arith.addf %1, %3 : vector<16x32xf32>
    %c0_5 = arith.constant 0 : index
    %c0_6 = arith.constant 0 : index
    %c0_7 = arith.constant 0 : index
    %5 = vector.load %arg3[%c0_5, %c0_6, %c0_7] : memref<2x1x8xf32, #tpu.memory_space<vmem>>, vector<2x1x8xf32>
    %cst = arith.constant 0.000000e+00 : f32
    %6 = vector.broadcast %cst : f32 to vector<16x32xf32>
    %c0_8 = arith.constant 0 : index
    %c0_9 = arith.constant 0 : index
    %c0_10 = arith.constant 0 : index
    %7 = vector.load %arg4[%c0_8, %c0_9, %c0_10] : memref<4x32x8xf32, #tpu.memory_space<vmem>>, vector<1x32x8xf32>
    %8 = vector.shape_cast %7 : vector<1x32x8xf32> to vector<32x8xf32>
    %cst_11 = arith.constant dense<0.000000e+00> : vector<16x8xf32>
    %9 = tpu.matmul %4, %8, %cst_11 {dimension_numbers = #tpu.dot_dimension_numbers<[1], [0], [0], [1], [0, 0, 1, 1], [], []>} : vector<16x32xf32>, vector<32x8xf32>, vector<16x8xf32> -> vector<16x8xf32>
    %c0_12 = arith.constant 0 : index
    %c0_13 = arith.constant 0 : index
    %c0_14 = arith.constant 0 : index
    %10 = vector.load %arg8[%c0_12, %c0_13, %c0_14] : memref<4x1x8xf32, #tpu.memory_space<vmem>>, vector<1x1x8xf32>
    %11 = vector.shape_cast %10 : vector<1x1x8xf32> to vector<1x8xf32>
    %12 = vector.broadcast %11 : vector<1x8xf32> to vector<16x8xf32>
    %13 = arith.addf %9, %12 : vector<16x8xf32>
    %c0_15 = arith.constant 0 : index
    %c0_16 = arith.constant 0 : index
    %c0_17 = arith.constant 0 : index
    %14 = vector.load %arg5[%c0_15, %c0_16, %c0_17] : memref<4x32x8xf32, #tpu.memory_space<vmem>>, vector<1x32x8xf32>
    %15 = vector.shape_cast %14 : vector<1x32x8xf32> to vector<32x8xf32>
    %cst_18 = arith.constant dense<0.000000e+00> : vector<16x8xf32>
    %16 = tpu.matmul %4, %15, %cst_18 {dimension_numbers = #tpu.dot_dimension_numbers<[1], [0], [0], [1], [0, 0, 1, 1], [], []>} : vector<16x32xf32>, vector<32x8xf32>, vector<16x8xf32> -> vector<16x8xf32>
    %c0_19 = arith.constant 0 : index
    %c0_20 = arith.constant 0 : index
    %c0_21 = arith.constant 0 : index
    %17 = vector.load %arg9[%c0_19, %c0_20, %c0_21] : memref<4x1x8xf32, #tpu.memory_space<vmem>>, vector<1x1x8xf32>
    %18 = vector.shape_cast %17 : vector<1x1x8xf32> to vector<1x8xf32>
    %19 = vector.broadcast %18 : vector<1x8xf32> to vector<16x8xf32>
    %20 = arith.addf %16, %19 : vector<16x8xf32>
    %c0_22 = arith.constant 0 : index
    %c0_23 = arith.constant 0 : index
    %c0_24 = arith.constant 0 : index
    %21 = vector.load %arg6[%c0_22, %c0_23, %c0_24] : memref<4x32x8xf32, #tpu.memory_space<vmem>>, vector<1x32x8xf32>
    %22 = vector.shape_cast %21 : vector<1x32x8xf32> to vector<32x8xf32>
    %cst_25 = arith.constant dense<0.000000e+00> : vector<16x8xf32>
    %23 = tpu.matmul %1, %22, %cst_25 {dimension_numbers = #tpu.dot_dimension_numbers<[1], [0], [0], [1], [0, 0, 1, 1], [], []>} : vector<16x32xf32>, vector<32x8xf32>, vector<16x8xf32> -> vector<16x8xf32>
    %c0_26 = arith.constant 0 : index
    %c0_27 = arith.constant 0 : index
    %c0_28 = arith.constant 0 : index
    %24 = vector.load %arg10[%c0_26, %c0_27, %c0_28] : memref<4x1x8xf32, #tpu.memory_space<vmem>>, vector<1x1x8xf32>
    %25 = vector.shape_cast %24 : vector<1x1x8xf32> to vector<1x8xf32>
    %26 = vector.broadcast %25 : vector<1x8xf32> to vector<16x8xf32>
    %27 = arith.addf %23, %26 : vector<16x8xf32>
    %28 = vector.shape_cast %13 : vector<16x8xf32> to vector<2x8x8xf32>
    %cst_29 = arith.constant 0.353553385 : f32
    %29 = vector.broadcast %cst_29 : f32 to vector<2x8x8xf32>
    %30 = arith.mulf %28, %29 : vector<2x8x8xf32>
    %31 = vector.shape_cast %20 : vector<16x8xf32> to vector<2x8x8xf32>
    %32 = vector.shape_cast %27 : vector<16x8xf32> to vector<2x8x8xf32>
    "tpu.trace_start"() <{level = 10 : i32, message = "wid,wjd->wij"}> : () -> ()
    %cst_30 = arith.constant dense<0.000000e+00> : vector<2x8x8xf32>
    %33 = tpu.matmul %30, %31, %cst_30 {dimension_numbers = #tpu.dot_dimension_numbers<[2], [2], [1], [1], [0, 0, 0, 1, 1, 1], [0], [0]>} : vector<2x8x8xf32>, vector<2x8x8xf32>, vector<2x8x8xf32> -> vector<2x8x8xf32>
    "tpu.trace_stop"() : () -> ()
    %34 = vector.broadcast %5 : vector<2x1x8xf32> to vector<2x8x8xf32>
    %35 = arith.addf %33, %34 : vector<2x8x8xf32>
    %cst_31 = arith.constant dense<0xFF800000> : vector<2x8xf32>
    %36 = vector.multi_reduction <maximumf>, %35, %cst_31 [2] : vector<2x8x8xf32> to vector<2x8xf32>
    %37 = vector.shape_cast %36 : vector<2x8xf32> to vector<2x8x1xf32>
    %38 = vector.broadcast %37 : vector<2x8x1xf32> to vector<2x8x8xf32>
    %39 = arith.subf %35, %38 : vector<2x8x8xf32>
    %40 = math.exp %39 : vector<2x8x8xf32>
    %cst_32 = arith.constant dense<0.000000e+00> : vector<2x8xf32>
    %41 = vector.multi_reduction <add>, %40, %cst_32 [2] : vector<2x8x8xf32> to vector<2x8xf32>
    %42 = vector.shape_cast %41 : vector<2x8xf32> to vector<2x8x1xf32>
    %43 = tpu.reciprocal %42 {approx = true} : vector<2x8x1xf32> -> vector<2x8x1xf32>
    %44 = vector.broadcast %43 : vector<2x8x1xf32> to vector<2x8x8xf32>
    %45 = arith.mulf %40, %44 : vector<2x8x8xf32>
    "tpu.trace_start"() <{level = 10 : i32, message = "wij,wjd->wid"}> : () -> ()
    %cst_33 = arith.constant dense<0.000000e+00> : vector<2x8x8xf32>
    %46 = tpu.matmul %45, %32, %cst_33 {dimension_numbers = #tpu.dot_dimension_numbers<[2], [1], [1], [2], [0, 0, 0, 1, 1, 2], [0], [0]>} : vector<2x8x8xf32>, vector<2x8x8xf32>, vector<2x8x8xf32> -> vector<2x8x8xf32>
    "tpu.trace_stop"() : () -> ()
    %47 = vector.shape_cast %46 : vector<2x8x8xf32> to vector<16x8xf32>
    %c0_34 = arith.constant 0 : index
    %c0_35 = arith.constant 0 : index
    %c0_36 = arith.constant 0 : index
    %48 = vector.load %arg7[%c0_34, %c0_35, %c0_36] : memref<4x8x32xf32, #tpu.memory_space<vmem>>, vector<1x8x32xf32>
    %49 = vector.shape_cast %48 : vector<1x8x32xf32> to vector<8x32xf32>
    %cst_37 = arith.constant dense<0.000000e+00> : vector<16x32xf32>
    %50 = tpu.matmul %47, %49, %cst_37 {dimension_numbers = #tpu.dot_dimension_numbers<[1], [0], [0], [1], [0, 0, 1, 1], [], []>} : vector<16x8xf32>, vector<8x32xf32>, vector<16x32xf32> -> vector<16x32xf32>
    %51 = arith.addf %6, %50 : vector<16x32xf32>
    %c1 = arith.constant 1 : index
    %c0_38 = arith.constant 0 : index
    %c0_39 = arith.constant 0 : index
    %52 = vector.load %arg4[%c1, %c0_38, %c0_39] : memref<4x32x8xf32, #tpu.memory_space<vmem>>, vector<1x32x8xf32>
    %53 = vector.shape_cast %52 : vector<1x32x8xf32> to vector<32x8xf32>
    %cst_40 = arith.constant dense<0.000000e+00> : vector<16x8xf32>
    %54 = tpu.matmul %4, %53, %cst_40 {dimension_numbers = #tpu.dot_dimension_numbers<[1], [0], [0], [1], [0, 0, 1, 1], [], []>} : vector<16x32xf32>, vector<32x8xf32>, vector<16x8xf32> -> vector<16x8xf32>
    %c1_41 = arith.constant 1 : index
    %c0_42 = arith.constant 0 : index
    %c0_43 = arith.constant 0 : index
    %55 = vector.load %arg8[%c1_41, %c0_42, %c0_43] : memref<4x1x8xf32, #tpu.memory_space<vmem>>, vector<1x1x8xf32>
    %56 = vector.shape_cast %55 : vector<1x1x8xf32> to vector<1x8xf32>
    %57 = vector.broadcast %56 : vector<1x8xf32> to vector<16x8xf32>
    %58 = arith.addf %54, %57 : vector<16x8xf32>
    %c1_44 = arith.constant 1 : index
    %c0_45 = arith.constant 0 : index
    %c0_46 = arith.constant 0 : index
    %59 = vector.load %arg5[%c1_44, %c0_45, %c0_46] : memref<4x32x8xf32, #tpu.memory_space<vmem>>, vector<1x32x8xf32>
    %60 = vector.shape_cast %59 : vector<1x32x8xf32> to vector<32x8xf32>
    %cst_47 = arith.constant dense<0.000000e+00> : vector<16x8xf32>
    %61 = tpu.matmul %4, %60, %cst_47 {dimension_numbers = #tpu.dot_dimension_numbers<[1], [0], [0], [1], [0, 0, 1, 1], [], []>} : vector<16x32xf32>, vector<32x8xf32>, vector<16x8xf32> -> vector<16x8xf32>
    %c1_48 = arith.constant 1 : index
    %c0_49 = arith.constant 0 : index
    %c0_50 = arith.constant 0 : index
    %62 = vector.load %arg9[%c1_48, %c0_49, %c0_50] : memref<4x1x8xf32, #tpu.memory_space<vmem>>, vector<1x1x8xf32>
    %63 = vector.shape_cast %62 : vector<1x1x8xf32> to vector<1x8xf32>
    %64 = vector.broadcast %63 : vector<1x8xf32> to vector<16x8xf32>
    %65 = arith.addf %61, %64 : vector<16x8xf32>
    %c1_51 = arith.constant 1 : index
    %c0_52 = arith.constant 0 : index
    %c0_53 = arith.constant 0 : index
    %66 = vector.load %arg6[%c1_51, %c0_52, %c0_53] : memref<4x32x8xf32, #tpu.memory_space<vmem>>, vector<1x32x8xf32>
    %67 = vector.shape_cast %66 : vector<1x32x8xf32> to vector<32x8xf32>
    %cst_54 = arith.constant dense<0.000000e+00> : vector<16x8xf32>
    %68 = tpu.matmul %1, %67, %cst_54 {dimension_numbers = #tpu.dot_dimension_numbers<[1], [0], [0], [1], [0, 0, 1, 1], [], []>} : vector<16x32xf32>, vector<32x8xf32>, vector<16x8xf32> -> vector<16x8xf32>
    %c1_55 = arith.constant 1 : index
    %c0_56 = arith.constant 0 : index
    %c0_57 = arith.constant 0 : index
    %69 = vector.load %arg10[%c1_55, %c0_56, %c0_57] : memref<4x1x8xf32, #tpu.memory_space<vmem>>, vector<1x1x8xf32>
    %70 = vector.shape_cast %69 : vector<1x1x8xf32> to vector<1x8xf32>
    %71 = vector.broadcast %70 : vector<1x8xf32> to vector<16x8xf32>
    %72 = arith.addf %68, %71 : vector<16x8xf32>
    %73 = vector.shape_cast %58 : vector<16x8xf32> to vector<2x8x8xf32>
    %cst_58 = arith.constant 0.353553385 : f32
    %74 = vector.broadcast %cst_58 : f32 to vector<2x8x8xf32>
    %75 = arith.mulf %73, %74 : vector<2x8x8xf32>
    %76 = vector.shape_cast %65 : vector<16x8xf32> to vector<2x8x8xf32>
    %77 = vector.shape_cast %72 : vector<16x8xf32> to vector<2x8x8xf32>
    "tpu.trace_start"() <{level = 10 : i32, message = "wid,wjd->wij"}> : () -> ()
    %cst_59 = arith.constant dense<0.000000e+00> : vector<2x8x8xf32>
    %78 = tpu.matmul %75, %76, %cst_59 {dimension_numbers = #tpu.dot_dimension_numbers<[2], [2], [1], [1], [0, 0, 0, 1, 1, 1], [0], [0]>} : vector<2x8x8xf32>, vector<2x8x8xf32>, vector<2x8x8xf32> -> vector<2x8x8xf32>
    "tpu.trace_stop"() : () -> ()
    %79 = vector.broadcast %5 : vector<2x1x8xf32> to vector<2x8x8xf32>
    %80 = arith.addf %78, %79 : vector<2x8x8xf32>
    %cst_60 = arith.constant dense<0xFF800000> : vector<2x8xf32>
    %81 = vector.multi_reduction <maximumf>, %80, %cst_60 [2] : vector<2x8x8xf32> to vector<2x8xf32>
    %82 = vector.shape_cast %81 : vector<2x8xf32> to vector<2x8x1xf32>
    %83 = vector.broadcast %82 : vector<2x8x1xf32> to vector<2x8x8xf32>
    %84 = arith.subf %80, %83 : vector<2x8x8xf32>
    %85 = math.exp %84 : vector<2x8x8xf32>
    %cst_61 = arith.constant dense<0.000000e+00> : vector<2x8xf32>
    %86 = vector.multi_reduction <add>, %85, %cst_61 [2] : vector<2x8x8xf32> to vector<2x8xf32>
    %87 = vector.shape_cast %86 : vector<2x8xf32> to vector<2x8x1xf32>
    %88 = tpu.reciprocal %87 {approx = true} : vector<2x8x1xf32> -> vector<2x8x1xf32>
    %89 = vector.broadcast %88 : vector<2x8x1xf32> to vector<2x8x8xf32>
    %90 = arith.mulf %85, %89 : vector<2x8x8xf32>
    "tpu.trace_start"() <{level = 10 : i32, message = "wij,wjd->wid"}> : () -> ()
    %cst_62 = arith.constant dense<0.000000e+00> : vector<2x8x8xf32>
    %91 = tpu.matmul %90, %77, %cst_62 {dimension_numbers = #tpu.dot_dimension_numbers<[2], [1], [1], [2], [0, 0, 0, 1, 1, 2], [0], [0]>} : vector<2x8x8xf32>, vector<2x8x8xf32>, vector<2x8x8xf32> -> vector<2x8x8xf32>
    "tpu.trace_stop"() : () -> ()
    %92 = vector.shape_cast %91 : vector<2x8x8xf32> to vector<16x8xf32>
    %c1_63 = arith.constant 1 : index
    %c0_64 = arith.constant 0 : index
    %c0_65 = arith.constant 0 : index
    %93 = vector.load %arg7[%c1_63, %c0_64, %c0_65] : memref<4x8x32xf32, #tpu.memory_space<vmem>>, vector<1x8x32xf32>
    %94 = vector.shape_cast %93 : vector<1x8x32xf32> to vector<8x32xf32>
    %cst_66 = arith.constant dense<0.000000e+00> : vector<16x32xf32>
    %95 = tpu.matmul %92, %94, %cst_66 {dimension_numbers = #tpu.dot_dimension_numbers<[1], [0], [0], [1], [0, 0, 1, 1], [], []>} : vector<16x8xf32>, vector<8x32xf32>, vector<16x32xf32> -> vector<16x32xf32>
    %96 = arith.addf %51, %95 : vector<16x32xf32>
    %c2 = arith.constant 2 : index
    %c0_67 = arith.constant 0 : index
    %c0_68 = arith.constant 0 : index
    %97 = vector.load %arg4[%c2, %c0_67, %c0_68] : memref<4x32x8xf32, #tpu.memory_space<vmem>>, vector<1x32x8xf32>
    %98 = vector.shape_cast %97 : vector<1x32x8xf32> to vector<32x8xf32>
    %cst_69 = arith.constant dense<0.000000e+00> : vector<16x8xf32>
    %99 = tpu.matmul %4, %98, %cst_69 {dimension_numbers = #tpu.dot_dimension_numbers<[1], [0], [0], [1], [0, 0, 1, 1], [], []>} : vector<16x32xf32>, vector<32x8xf32>, vector<16x8xf32> -> vector<16x8xf32>
    %c2_70 = arith.constant 2 : index
    %c0_71 = arith.constant 0 : index
    %c0_72 = arith.constant 0 : index
    %100 = vector.load %arg8[%c2_70, %c0_71, %c0_72] : memref<4x1x8xf32, #tpu.memory_space<vmem>>, vector<1x1x8xf32>
    %101 = vector.shape_cast %100 : vector<1x1x8xf32> to vector<1x8xf32>
    %102 = vector.broadcast %101 : vector<1x8xf32> to vector<16x8xf32>
    %103 = arith.addf %99, %102 : vector<16x8xf32>
    %c2_73 = arith.constant 2 : index
    %c0_74 = arith.constant 0 : index
    %c0_75 = arith.constant 0 : index
    %104 = vector.load %arg5[%c2_73, %c0_74, %c0_75] : memref<4x32x8xf32, #tpu.memory_space<vmem>>, vector<1x32x8xf32>
    %105 = vector.shape_cast %104 : vector<1x32x8xf32> to vector<32x8xf32>
    %cst_76 = arith.constant dense<0.000000e+00> : vector<16x8xf32>
    %106 = tpu.matmul %4, %105, %cst_76 {dimension_numbers = #tpu.dot_dimension_numbers<[1], [0], [0], [1], [0, 0, 1, 1], [], []>} : vector<16x32xf32>, vector<32x8xf32>, vector<16x8xf32> -> vector<16x8xf32>
    %c2_77 = arith.constant 2 : index
    %c0_78 = arith.constant 0 : index
    %c0_79 = arith.constant 0 : index
    %107 = vector.load %arg9[%c2_77, %c0_78, %c0_79] : memref<4x1x8xf32, #tpu.memory_space<vmem>>, vector<1x1x8xf32>
    %108 = vector.shape_cast %107 : vector<1x1x8xf32> to vector<1x8xf32>
    %109 = vector.broadcast %108 : vector<1x8xf32> to vector<16x8xf32>
    %110 = arith.addf %106, %109 : vector<16x8xf32>
    %c2_80 = arith.constant 2 : index
    %c0_81 = arith.constant 0 : index
    %c0_82 = arith.constant 0 : index
    %111 = vector.load %arg6[%c2_80, %c0_81, %c0_82] : memref<4x32x8xf32, #tpu.memory_space<vmem>>, vector<1x32x8xf32>
    %112 = vector.shape_cast %111 : vector<1x32x8xf32> to vector<32x8xf32>
    %cst_83 = arith.constant dense<0.000000e+00> : vector<16x8xf32>
    %113 = tpu.matmul %1, %112, %cst_83 {dimension_numbers = #tpu.dot_dimension_numbers<[1], [0], [0], [1], [0, 0, 1, 1], [], []>} : vector<16x32xf32>, vector<32x8xf32>, vector<16x8xf32> -> vector<16x8xf32>
    %c2_84 = arith.constant 2 : index
    %c0_85 = arith.constant 0 : index
    %c0_86 = arith.constant 0 : index
    %114 = vector.load %arg10[%c2_84, %c0_85, %c0_86] : memref<4x1x8xf32, #tpu.memory_space<vmem>>, vector<1x1x8xf32>
    %115 = vector.shape_cast %114 : vector<1x1x8xf32> to vector<1x8xf32>
    %116 = vector.broadcast %115 : vector<1x8xf32> to vector<16x8xf32>
    %117 = arith.addf %113, %116 : vector<16x8xf32>
    %118 = vector.shape_cast %103 : vector<16x8xf32> to vector<2x8x8xf32>
    %cst_87 = arith.constant 0.353553385 : f32
    %119 = vector.broadcast %cst_87 : f32 to vector<2x8x8xf32>
    %120 = arith.mulf %118, %119 : vector<2x8x8xf32>
    %121 = vector.shape_cast %110 : vector<16x8xf32> to vector<2x8x8xf32>
    %122 = vector.shape_cast %117 : vector<16x8xf32> to vector<2x8x8xf32>
    "tpu.trace_start"() <{level = 10 : i32, message = "wid,wjd->wij"}> : () -> ()
    %cst_88 = arith.constant dense<0.000000e+00> : vector<2x8x8xf32>
    %123 = tpu.matmul %120, %121, %cst_88 {dimension_numbers = #tpu.dot_dimension_numbers<[2], [2], [1], [1], [0, 0, 0, 1, 1, 1], [0], [0]>} : vector<2x8x8xf32>, vector<2x8x8xf32>, vector<2x8x8xf32> -> vector<2x8x8xf32>
    "tpu.trace_stop"() : () -> ()
    %124 = vector.broadcast %5 : vector<2x1x8xf32> to vector<2x8x8xf32>
    %125 = arith.addf %123, %124 : vector<2x8x8xf32>
    %cst_89 = arith.constant dense<0xFF800000> : vector<2x8xf32>
    %126 = vector.multi_reduction <maximumf>, %125, %cst_89 [2] : vector<2x8x8xf32> to vector<2x8xf32>
    %127 = vector.shape_cast %126 : vector<2x8xf32> to vector<2x8x1xf32>
    %128 = vector.broadcast %127 : vector<2x8x1xf32> to vector<2x8x8xf32>
    %129 = arith.subf %125, %128 : vector<2x8x8xf32>
    %130 = math.exp %129 : vector<2x8x8xf32>
    %cst_90 = arith.constant dense<0.000000e+00> : vector<2x8xf32>
    %131 = vector.multi_reduction <add>, %130, %cst_90 [2] : vector<2x8x8xf32> to vector<2x8xf32>
    %132 = vector.shape_cast %131 : vector<2x8xf32> to vector<2x8x1xf32>
    %133 = tpu.reciprocal %132 {approx = true} : vector<2x8x1xf32> -> vector<2x8x1xf32>
    %134 = vector.broadcast %133 : vector<2x8x1xf32> to vector<2x8x8xf32>
    %135 = arith.mulf %130, %134 : vector<2x8x8xf32>
    "tpu.trace_start"() <{level = 10 : i32, message = "wij,wjd->wid"}> : () -> ()
    %cst_91 = arith.constant dense<0.000000e+00> : vector<2x8x8xf32>
    %136 = tpu.matmul %135, %122, %cst_91 {dimension_numbers = #tpu.dot_dimension_numbers<[2], [1], [1], [2], [0, 0, 0, 1, 1, 2], [0], [0]>} : vector<2x8x8xf32>, vector<2x8x8xf32>, vector<2x8x8xf32> -> vector<2x8x8xf32>
    "tpu.trace_stop"() : () -> ()
    %137 = vector.shape_cast %136 : vector<2x8x8xf32> to vector<16x8xf32>
    %c2_92 = arith.constant 2 : index
    %c0_93 = arith.constant 0 : index
    %c0_94 = arith.constant 0 : index
    %138 = vector.load %arg7[%c2_92, %c0_93, %c0_94] : memref<4x8x32xf32, #tpu.memory_space<vmem>>, vector<1x8x32xf32>
    %139 = vector.shape_cast %138 : vector<1x8x32xf32> to vector<8x32xf32>
    %cst_95 = arith.constant dense<0.000000e+00> : vector<16x32xf32>
    %140 = tpu.matmul %137, %139, %cst_95 {dimension_numbers = #tpu.dot_dimension_numbers<[1], [0], [0], [1], [0, 0, 1, 1], [], []>} : vector<16x8xf32>, vector<8x32xf32>, vector<16x32xf32> -> vector<16x32xf32>
    %141 = arith.addf %96, %140 : vector<16x32xf32>
    %c3 = arith.constant 3 : index
    %c0_96 = arith.constant 0 : index
    %c0_97 = arith.constant 0 : index
    %142 = vector.load %arg4[%c3, %c0_96, %c0_97] : memref<4x32x8xf32, #tpu.memory_space<vmem>>, vector<1x32x8xf32>
    %143 = vector.shape_cast %142 : vector<1x32x8xf32> to vector<32x8xf32>
    %cst_98 = arith.constant dense<0.000000e+00> : vector<16x8xf32>
    %144 = tpu.matmul %4, %143, %cst_98 {dimension_numbers = #tpu.dot_dimension_numbers<[1], [0], [0], [1], [0, 0, 1, 1], [], []>} : vector<16x32xf32>, vector<32x8xf32>, vector<16x8xf32> -> vector<16x8xf32>
    %c3_99 = arith.constant 3 : index
    %c0_100 = arith.constant 0 : index
    %c0_101 = arith.constant 0 : index
    %145 = vector.load %arg8[%c3_99, %c0_100, %c0_101] : memref<4x1x8xf32, #tpu.memory_space<vmem>>, vector<1x1x8xf32>
    %146 = vector.shape_cast %145 : vector<1x1x8xf32> to vector<1x8xf32>
    %147 = vector.broadcast %146 : vector<1x8xf32> to vector<16x8xf32>
    %148 = arith.addf %144, %147 : vector<16x8xf32>
    %c3_102 = arith.constant 3 : index
    %c0_103 = arith.constant 0 : index
    %c0_104 = arith.constant 0 : index
    %149 = vector.load %arg5[%c3_102, %c0_103, %c0_104] : memref<4x32x8xf32, #tpu.memory_space<vmem>>, vector<1x32x8xf32>
    %150 = vector.shape_cast %149 : vector<1x32x8xf32> to vector<32x8xf32>
    %cst_105 = arith.constant dense<0.000000e+00> : vector<16x8xf32>
    %151 = tpu.matmul %4, %150, %cst_105 {dimension_numbers = #tpu.dot_dimension_numbers<[1], [0], [0], [1], [0, 0, 1, 1], [], []>} : vector<16x32xf32>, vector<32x8xf32>, vector<16x8xf32> -> vector<16x8xf32>
    %c3_106 = arith.constant 3 : index
    %c0_107 = arith.constant 0 : index
    %c0_108 = arith.constant 0 : index
    %152 = vector.load %arg9[%c3_106, %c0_107, %c0_108] : memref<4x1x8xf32, #tpu.memory_space<vmem>>, vector<1x1x8xf32>
    %153 = vector.shape_cast %152 : vector<1x1x8xf32> to vector<1x8xf32>
    %154 = vector.broadcast %153 : vector<1x8xf32> to vector<16x8xf32>
    %155 = arith.addf %151, %154 : vector<16x8xf32>
    %c3_109 = arith.constant 3 : index
    %c0_110 = arith.constant 0 : index
    %c0_111 = arith.constant 0 : index
    %156 = vector.load %arg6[%c3_109, %c0_110, %c0_111] : memref<4x32x8xf32, #tpu.memory_space<vmem>>, vector<1x32x8xf32>
    %157 = vector.shape_cast %156 : vector<1x32x8xf32> to vector<32x8xf32>
    %cst_112 = arith.constant dense<0.000000e+00> : vector<16x8xf32>
    %158 = tpu.matmul %1, %157, %cst_112 {dimension_numbers = #tpu.dot_dimension_numbers<[1], [0], [0], [1], [0, 0, 1, 1], [], []>} : vector<16x32xf32>, vector<32x8xf32>, vector<16x8xf32> -> vector<16x8xf32>
    %c3_113 = arith.constant 3 : index
    %c0_114 = arith.constant 0 : index
    %c0_115 = arith.constant 0 : index
    %159 = vector.load %arg10[%c3_113, %c0_114, %c0_115] : memref<4x1x8xf32, #tpu.memory_space<vmem>>, vector<1x1x8xf32>
    %160 = vector.shape_cast %159 : vector<1x1x8xf32> to vector<1x8xf32>
    %161 = vector.broadcast %160 : vector<1x8xf32> to vector<16x8xf32>
    %162 = arith.addf %158, %161 : vector<16x8xf32>
    %163 = vector.shape_cast %148 : vector<16x8xf32> to vector<2x8x8xf32>
    %cst_116 = arith.constant 0.353553385 : f32
    %164 = vector.broadcast %cst_116 : f32 to vector<2x8x8xf32>
    %165 = arith.mulf %163, %164 : vector<2x8x8xf32>
    %166 = vector.shape_cast %155 : vector<16x8xf32> to vector<2x8x8xf32>
    %167 = vector.shape_cast %162 : vector<16x8xf32> to vector<2x8x8xf32>
    "tpu.trace_start"() <{level = 10 : i32, message = "wid,wjd->wij"}> : () -> ()
    %cst_117 = arith.constant dense<0.000000e+00> : vector<2x8x8xf32>
    %168 = tpu.matmul %165, %166, %cst_117 {dimension_numbers = #tpu.dot_dimension_numbers<[2], [2], [1], [1], [0, 0, 0, 1, 1, 1], [0], [0]>} : vector<2x8x8xf32>, vector<2x8x8xf32>, vector<2x8x8xf32> -> vector<2x8x8xf32>
    "tpu.trace_stop"() : () -> ()
    %169 = vector.broadcast %5 : vector<2x1x8xf32> to vector<2x8x8xf32>
    %170 = arith.addf %168, %169 : vector<2x8x8xf32>
    %cst_118 = arith.constant dense<0xFF800000> : vector<2x8xf32>
    %171 = vector.multi_reduction <maximumf>, %170, %cst_118 [2] : vector<2x8x8xf32> to vector<2x8xf32>
    %172 = vector.shape_cast %171 : vector<2x8xf32> to vector<2x8x1xf32>
    %173 = vector.broadcast %172 : vector<2x8x1xf32> to vector<2x8x8xf32>
    %174 = arith.subf %170, %173 : vector<2x8x8xf32>
    %175 = math.exp %174 : vector<2x8x8xf32>
    %cst_119 = arith.constant dense<0.000000e+00> : vector<2x8xf32>
    %176 = vector.multi_reduction <add>, %175, %cst_119 [2] : vector<2x8x8xf32> to vector<2x8xf32>
    %177 = vector.shape_cast %176 : vector<2x8xf32> to vector<2x8x1xf32>
    %178 = tpu.reciprocal %177 {approx = true} : vector<2x8x1xf32> -> vector<2x8x1xf32>
    %179 = vector.broadcast %178 : vector<2x8x1xf32> to vector<2x8x8xf32>
    %180 = arith.mulf %175, %179 : vector<2x8x8xf32>
    "tpu.trace_start"() <{level = 10 : i32, message = "wij,wjd->wid"}> : () -> ()
    %cst_120 = arith.constant dense<0.000000e+00> : vector<2x8x8xf32>
    %181 = tpu.matmul %180, %167, %cst_120 {dimension_numbers = #tpu.dot_dimension_numbers<[2], [1], [1], [2], [0, 0, 0, 1, 1, 2], [0], [0]>} : vector<2x8x8xf32>, vector<2x8x8xf32>, vector<2x8x8xf32> -> vector<2x8x8xf32>
    "tpu.trace_stop"() : () -> ()
    %182 = vector.shape_cast %181 : vector<2x8x8xf32> to vector<16x8xf32>
    %c3_121 = arith.constant 3 : index
    %c0_122 = arith.constant 0 : index
    %c0_123 = arith.constant 0 : index
    %183 = vector.load %arg7[%c3_121, %c0_122, %c0_123] : memref<4x8x32xf32, #tpu.memory_space<vmem>>, vector<1x8x32xf32>
    %184 = vector.shape_cast %183 : vector<1x8x32xf32> to vector<8x32xf32>
    %cst_124 = arith.constant dense<0.000000e+00> : vector<16x32xf32>
    %185 = tpu.matmul %182, %184, %cst_124 {dimension_numbers = #tpu.dot_dimension_numbers<[1], [0], [0], [1], [0, 0, 1, 1], [], []>} : vector<16x8xf32>, vector<8x32xf32>, vector<16x32xf32> -> vector<16x32xf32>
    %186 = arith.addf %141, %185 : vector<16x32xf32>
    %c0_125 = arith.constant 0 : index
    %c0_126 = arith.constant 0 : index
    %187 = vector.load %arg11[%c0_125, %c0_126] : memref<1x32xf32, #tpu.memory_space<vmem>>, vector<1x32xf32>
    %188 = vector.broadcast %187 : vector<1x32xf32> to vector<16x32xf32>
    %189 = arith.addf %186, %188 : vector<16x32xf32>
    %190 = arith.addf %1, %189 : vector<16x32xf32>
    %c0_127 = arith.constant 0 : index
    %c0_128 = arith.constant 0 : index
    %191 = vector.load %arg12[%c0_127, %c0_128] : memref<1x32xf32, #tpu.memory_space<vmem>>, vector<1x32xf32>
    %c0_129 = arith.constant 0 : index
    %c0_130 = arith.constant 0 : index
    %192 = vector.load %arg13[%c0_129, %c0_130] : memref<1x32xf32, #tpu.memory_space<vmem>>, vector<1x32xf32>
    %cst_131 = arith.constant dense<0.000000e+00> : vector<16xf32>
    %193 = vector.multi_reduction <add>, %190, %cst_131 [1] : vector<16x32xf32> to vector<16xf32>
    %194 = vector.shape_cast %193 : vector<16xf32> to vector<16x1xf32>
    %cst_132 = arith.constant 3.200000e+01 : f32
    %195 = vector.broadcast %cst_132 : f32 to vector<16x1xf32>
    %196 = arith.divf %194, %195 : vector<16x1xf32>
    %197 = vector.broadcast %196 : vector<16x1xf32> to vector<16x32xf32>
    %198 = arith.subf %190, %197 : vector<16x32xf32>
    %199 = arith.mulf %198, %198 : vector<16x32xf32>
    %cst_133 = arith.constant dense<0.000000e+00> : vector<16xf32>
    %200 = vector.multi_reduction <add>, %199, %cst_133 [1] : vector<16x32xf32> to vector<16xf32>
    %201 = vector.shape_cast %200 : vector<16xf32> to vector<16x1xf32>
    %cst_134 = arith.constant 3.200000e+01 : f32
    %202 = vector.broadcast %cst_134 : f32 to vector<16x1xf32>
    %203 = arith.divf %201, %202 : vector<16x1xf32>
    %204 = vector.broadcast %196 : vector<16x1xf32> to vector<16x32xf32>
    %205 = arith.subf %190, %204 : vector<16x32xf32>
    %cst_135 = arith.constant 9.99999974E-6 : f32
    %206 = vector.broadcast %cst_135 : f32 to vector<16x1xf32>
    %207 = arith.addf %203, %206 : vector<16x1xf32>
    %208 = math.rsqrt %207 : vector<16x1xf32>
    %209 = vector.broadcast %208 : vector<16x1xf32> to vector<16x32xf32>
    %210 = arith.mulf %205, %209 : vector<16x32xf32>
    %211 = vector.broadcast %191 : vector<1x32xf32> to vector<16x32xf32>
    %212 = arith.mulf %210, %211 : vector<16x32xf32>
    %213 = vector.broadcast %192 : vector<1x32xf32> to vector<16x32xf32>
    %214 = arith.addf %212, %213 : vector<16x32xf32>
    %c0_136 = arith.constant 0 : index
    %c0_137 = arith.constant 0 : index
    %215 = vector.load %arg14[%c0_136, %c0_137] : memref<32x64xf32, #tpu.memory_space<vmem>>, vector<32x64xf32>
    %cst_138 = arith.constant dense<0.000000e+00> : vector<16x64xf32>
    %216 = tpu.matmul %214, %215, %cst_138 {dimension_numbers = #tpu.dot_dimension_numbers<[1], [0], [0], [1], [0, 0, 1, 1], [], []>} : vector<16x32xf32>, vector<32x64xf32>, vector<16x64xf32> -> vector<16x64xf32>
    %c0_139 = arith.constant 0 : index
    %c0_140 = arith.constant 0 : index
    %217 = vector.load %arg15[%c0_139, %c0_140] : memref<1x64xf32, #tpu.memory_space<vmem>>, vector<1x64xf32>
    %218 = vector.broadcast %217 : vector<1x64xf32> to vector<16x64xf32>
    %219 = arith.addf %216, %218 : vector<16x64xf32>
    %cst_141 = arith.constant 0.000000e+00 : f32
    %220 = vector.broadcast %cst_141 : f32 to vector<16x64xf32>
    %221 = arith.maximumf %219, %220 : vector<16x64xf32>
    %c0_142 = arith.constant 0 : index
    %c0_143 = arith.constant 0 : index
    %222 = vector.load %arg16[%c0_142, %c0_143] : memref<64x32xf32, #tpu.memory_space<vmem>>, vector<64x32xf32>
    %cst_144 = arith.constant dense<0.000000e+00> : vector<16x32xf32>
    %223 = tpu.matmul %221, %222, %cst_144 {dimension_numbers = #tpu.dot_dimension_numbers<[1], [0], [0], [1], [0, 0, 1, 1], [], []>} : vector<16x64xf32>, vector<64x32xf32>, vector<16x32xf32> -> vector<16x32xf32>
    %c0_145 = arith.constant 0 : index
    %c0_146 = arith.constant 0 : index
    %224 = vector.load %arg17[%c0_145, %c0_146] : memref<1x32xf32, #tpu.memory_space<vmem>>, vector<1x32xf32>
    %225 = vector.broadcast %224 : vector<1x32xf32> to vector<16x32xf32>
    %226 = arith.addf %223, %225 : vector<16x32xf32>
    %227 = arith.addf %214, %226 : vector<16x32xf32>
    %c0_147 = arith.constant 0 : index
    %c0_148 = arith.constant 0 : index
    %228 = vector.load %arg18[%c0_147, %c0_148] : memref<1x32xf32, #tpu.memory_space<vmem>>, vector<1x32xf32>
    %c0_149 = arith.constant 0 : index
    %c0_150 = arith.constant 0 : index
    %229 = vector.load %arg19[%c0_149, %c0_150] : memref<1x32xf32, #tpu.memory_space<vmem>>, vector<1x32xf32>
    %cst_151 = arith.constant dense<0.000000e+00> : vector<16xf32>
    %230 = vector.multi_reduction <add>, %227, %cst_151 [1] : vector<16x32xf32> to vector<16xf32>
    %231 = vector.shape_cast %230 : vector<16xf32> to vector<16x1xf32>
    %cst_152 = arith.constant 3.200000e+01 : f32
    %232 = vector.broadcast %cst_152 : f32 to vector<16x1xf32>
    %233 = arith.divf %231, %232 : vector<16x1xf32>
    %234 = vector.broadcast %233 : vector<16x1xf32> to vector<16x32xf32>
    %235 = arith.subf %227, %234 : vector<16x32xf32>
    %236 = arith.mulf %235, %235 : vector<16x32xf32>
    %cst_153 = arith.constant dense<0.000000e+00> : vector<16xf32>
    %237 = vector.multi_reduction <add>, %236, %cst_153 [1] : vector<16x32xf32> to vector<16xf32>
    %238 = vector.shape_cast %237 : vector<16xf32> to vector<16x1xf32>
    %cst_154 = arith.constant 3.200000e+01 : f32
    %239 = vector.broadcast %cst_154 : f32 to vector<16x1xf32>
    %240 = arith.divf %238, %239 : vector<16x1xf32>
    %241 = vector.broadcast %233 : vector<16x1xf32> to vector<16x32xf32>
    %242 = arith.subf %227, %241 : vector<16x32xf32>
    %cst_155 = arith.constant 9.99999974E-6 : f32
    %243 = vector.broadcast %cst_155 : f32 to vector<16x1xf32>
    %244 = arith.addf %240, %243 : vector<16x1xf32>
    %245 = math.rsqrt %244 : vector<16x1xf32>
    %246 = vector.broadcast %245 : vector<16x1xf32> to vector<16x32xf32>
    %247 = arith.mulf %242, %246 : vector<16x32xf32>
    %248 = vector.broadcast %228 : vector<1x32xf32> to vector<16x32xf32>
    %249 = arith.mulf %247, %248 : vector<16x32xf32>
    %250 = vector.broadcast %229 : vector<1x32xf32> to vector<16x32xf32>
    %251 = arith.addf %249, %250 : vector<16x32xf32>
    %252 = vector.shape_cast %251 : vector<16x32xf32> to vector<2x8x32xf32>
    %c0_156 = arith.constant 0 : index
    %c0_157 = arith.constant 0 : index
    %c0_158 = arith.constant 0 : index
    %253 = vector.load %arg20[%c0_156, %c0_157, %c0_158] : memref<2x8x32xf32, #tpu.memory_space<vmem>>, vector<2x8x32xf32>
    tpu.vector_store %arg20[%c0_156, %c0_157, %c0_158], %252 {strides = array<i32>} : memref<2x8x32xf32, #tpu.memory_space<vmem>>, vector<2x8x32xf32>,
    return
  }
  func.func @transform_0(%arg0: i32) -> (i32, i32, i32) {
    %c0_i32 = arith.constant 0 : i32
    %c0_i32_0 = arith.constant 0 : i32
    %c0_i32_1 = arith.constant 0 : i32
    return %arg0, %c0_i32, %c0_i32_0 : i32, i32, i32
  }
  func.func @transform_1(%arg0: i32) -> (i32, i32, i32) {
    %c0_i32 = arith.constant 0 : i32
    %c0_i32_0 = arith.constant 0 : i32
    %c0_i32_1 = arith.constant 0 : i32
    return %arg0, %c0_i32, %c0_i32_0 : i32, i32, i32
  }
  func.func @transform_2(%arg0: i32) -> (i32, i32, i32) {
    %c0_i32 = arith.constant 0 : i32
    %c0_i32_0 = arith.constant 0 : i32
    %c0_i32_1 = arith.constant 0 : i32
    return %arg0, %c0_i32, %c0_i32_0 : i32, i32, i32
  }
  func.func @transform_3(%arg0: i32) -> (i32, i32, i32) {
    %c0_i32 = arith.constant 0 : i32
    %c0_i32_0 = arith.constant 0 : i32
    %c0_i32_1 = arith.constant 0 : i32
    %c0_i32_2 = arith.constant 0 : i32
    return %c0_i32, %c0_i32_0, %c0_i32_1 : i32, i32, i32
  }
  func.func @transform_4(%arg0: i32) -> (i32, i32, i32) {
    %c0_i32 = arith.constant 0 : i32
    %c0_i32_0 = arith.constant 0 : i32
    %c0_i32_1 = arith.constant 0 : i32
    %c0_i32_2 = arith.constant 0 : i32
    return %c0_i32, %c0_i32_0, %c0_i32_1 : i32, i32, i32
  }
  func.func @transform_5(%arg0: i32) -> (i32, i32, i32) {
    %c0_i32 = arith.constant 0 : i32
    %c0_i32_0 = arith.constant 0 : i32
    %c0_i32_1 = arith.constant 0 : i32
    %c0_i32_2 = arith.constant 0 : i32
    return %c0_i32, %c0_i32_0, %c0_i32_1 : i32, i32, i32
  }
  func.func @transform_6(%arg0: i32) -> (i32, i32, i32) {
    %c0_i32 = arith.constant 0 : i32
    %c0_i32_0 = arith.constant 0 : i32
    %c0_i32_1 = arith.constant 0 : i32
    %c0_i32_2 = arith.constant 0 : i32
    return %c0_i32, %c0_i32_0, %c0_i32_1 : i32, i32, i32
  }
  func.func @transform_7(%arg0: i32) -> (i32, i32, i32) {
    %c0_i32 = arith.constant 0 : i32
    %c0_i32_0 = arith.constant 0 : i32
    %c0_i32_1 = arith.constant 0 : i32
    %c0_i32_2 = arith.constant 0 : i32
    return %c0_i32, %c0_i32_0, %c0_i32_1 : i32, i32, i32
  }
  func.func @transform_8(%arg0: i32) -> (i32, i32, i32) {
    %c0_i32 = arith.constant 0 : i32
    %c0_i32_0 = arith.constant 0 : i32
    %c0_i32_1 = arith.constant 0 : i32
    %c0_i32_2 = arith.constant 0 : i32
    return %c0_i32, %c0_i32_0, %c0_i32_1 : i32, i32, i32
  }
  func.func @transform_9(%arg0: i32) -> (i32, i32, i32) {
    %c0_i32 = arith.constant 0 : i32
    %c0_i32_0 = arith.constant 0 : i32
    %c0_i32_1 = arith.constant 0 : i32
    %c0_i32_2 = arith.constant 0 : i32
    return %c0_i32, %c0_i32_0, %c0_i32_1 : i32, i32, i32
  }
  func.func @transform_10(%arg0: i32) -> (i32, i32) {
    %c0_i32 = arith.constant 0 : i32
    %c0_i32_0 = arith.constant 0 : i32
    %c0_i32_1 = arith.constant 0 : i32
    return %c0_i32, %c0_i32_0 : i32, i32
  }
  func.func @transform_11(%arg0: i32) -> (i32, i32) {
    %c0_i32 = arith.constant 0 : i32
    %c0_i32_0 = arith.constant 0 : i32
    %c0_i32_1 = arith.constant 0 : i32
    return %c0_i32, %c0_i32_0 : i32, i32
  }
  func.func @transform_12(%arg0: i32) -> (i32, i32) {
    %c0_i32 = arith.constant 0 : i32
    %c0_i32_0 = arith.constant 0 : i32
    %c0_i32_1 = arith.constant 0 : i32
    return %c0_i32, %c0_i32_0 : i32, i32
  }
  func.func @transform_13(%arg0: i32) -> (i32, i32) {
    %c0_i32 = arith.constant 0 : i32
    %c0_i32_0 = arith.constant 0 : i32
    %c0_i32_1 = arith.constant 0 : i32
    return %c0_i32, %c0_i32_0 : i32, i32
  }
  func.func @transform_14(%arg0: i32) -> (i32, i32) {
    %c0_i32 = arith.constant 0 : i32
    %c0_i32_0 = arith.constant 0 : i32
    %c0_i32_1 = arith.constant 0 : i32
    return %c0_i32, %c0_i32_0 : i32, i32
  }
  func.func @transform_15(%arg0: i32) -> (i32, i32) {
    %c0_i32 = arith.constant 0 : i32
    %c0_i32_0 = arith.constant 0 : i32
    %c0_i32_1 = arith.constant 0 : i32
    return %c0_i32, %c0_i32_0 : i32, i32
  }
  func.func @transform_16(%arg0: i32) -> (i32, i32) {
    %c0_i32 = arith.constant 0 : i32
    %c0_i32_0 = arith.constant 0 : i32
    %c0_i32_1 = arith.constant 0 : i32
    return %c0_i32, %c0_i32_0 : i32, i32
  }
  func.func @transform_17(%arg0: i32) -> (i32, i32) {
    %c0_i32 = arith.constant 0 : i32
    %c0_i32_0 = arith.constant 0 : i32
    %c0_i32_1 = arith.constant 0 : i32
    return %c0_i32, %c0_i32_0 : i32, i32
  }
  func.func @transform_18(%arg0: i32) -> (i32, i32) {
    %c0_i32 = arith.constant 0 : i32
    %c0_i32_0 = arith.constant 0 : i32
    %c0_i32_1 = arith.constant 0 : i32
    return %c0_i32, %c0_i32_0 : i32, i32
  }
  func.func @transform_19(%arg0: i32) -> (i32, i32, i32) {
    %c0_i32 = arith.constant 0 : i32
    %c0_i32_0 = arith.constant 0 : i32
    %c0_i32_1 = arith.constant 0 : i32
    return %arg0, %c0_i32, %c0_i32_0 : i32, i32, i32
  }
}

</mosaic_0001>

<bundles_post_ra>
// kernel: tpu_custom_call.1
= control target key start
LH: loop header
LB: loop body
LE: loop exit
PB: predicated region body
PF: predicated region fallthrough
CT: control target
= control target key end

     0   :  { %s2055_s0 = inlined_call_operand.vmem [shape: f32[2,8,32], index: 0, kind: input, shape index: {}]   ;;  %s2056_s1 = inlined_call_operand.vmem [shape: f32[2,8,32], index: 1, kind: input, shape index: {}]   ;;  %s2057_s2 = inlined_call_operand.vmem [shape: f32[2,1,8], index: 2, kind: input, shape index: {}]   ;;  %s2058_s3 = inlined_call_operand.vmem [shape: f32[4,32,8], index: 3, kind: input, shape index: {}]   ;;  %s2059_s4 = inlined_call_operand.vmem [shape: f32[4,32,8], index: 4, kind: input, shape index: {}]   ;;  %s2060_s5 = inlined_call_operand.vmem [shape: f32[4,32,8], index: 5, kind: input, shape index: {}]   ;;  %s2061_s6 = inlined_call_operand.vmem [shape: f32[4,8,32], index: 6, kind: input, shape index: {}]   ;;  %s2062_s7 = inlined_call_operand.vmem [shape: f32[4,1,8], index: 7, kind: input, shape index: {}]   ;;  %s2063_s8 = inlined_call_operand.vmem [shape: f32[4,1,8], index: 8, kind: input, shape index: {}]   ;;  %s2064_s9 = inlined_call_operand.vmem [shape: f32[4,1,8], index: 9, kind: input, shape index: {}]   ;;  %s2065_s10 = inlined_call_operand.vmem [shape: f32[1,32], index: 10, kind: input, shape index: {}]   ;;  %s2066_s11 = inlined_call_operand.vmem [shape: f32[1,32], index: 11, kind: input, shape index: {}]   ;;  %s2067_s12 = inlined_call_operand.vmem [shape: f32[1,32], index: 12, kind: input, shape index: {}]   ;;  %s2068_s13 = inlined_call_operand.vmem [shape: f32[32,64], index: 13, kind: input, shape index: {}]   ;;  %s2069_s14 = inlined_call_operand.vmem [shape: f32[1,64], index: 14, kind: input, shape index: {}]   ;;  %s2070_s15 = inlined_call_operand.vmem [shape: f32[64,32], index: 15, kind: input, shape index: {}]   ;;  %s2071_s16 = inlined_call_operand.vmem [shape: f32[1,32], index: 16, kind: input, shape index: {}]   ;;  %s2072_s17 = inlined_call_operand.vmem [shape: f32[1,32], index: 17, kind: input, shape index: {}]   ;;  %s2073_s18 = inlined_call_operand.vmem [shape: f32[1,32], index: 18, kind: input, shape index: {}]   ;;  %s2074_s19 = inlined_call_operand.hbm [shape: f32[2,8,32], index: 19, kind: output, shape index: {}]  }
   0x1   :  { %2079 = sst [smem:[#allocation5_spill]] %s2055_s0 }
   0x2   :  { %2080 = sst [smem:[#allocation6_spill]] %s2056_s1 }
   0x3   :  { %2081 = sst [smem:[#allocation7_spill]] %s2057_s2 }
   0x4   :  { %2082 = sst [smem:[#allocation8_spill]] %s2058_s3 }
   0x5   :  { %v112_v0 = vld [vmem:[%s2059_s4 + $0x18] sm:$0xff]  ;;  %s2083_s1 = sld [smem:[#allocation8_spill]]  ;;  %v111_v2 = vld [vmem:[%s2059_s4 + $0x10] sm:$0xff]  ;;  %v110_v4 = vld [vmem:[%s2059_s4 + $0x8] sm:$0xff]  ;;  %vm79_vm0 = vcmask 261120  }
   0x6   :  { %129 = vmatpush.msra.mxu1 %v112_v0  ;;  %s2084_s0 = sld [smem:[#allocation5_spill]]  ;;  %v109_v7 = vld [vmem:[%s2059_s4] sm:$0xff] }
   0x7   :  { %s2085_s2 = sld [smem:[#allocation6_spill]] }
   0x8   :  { %130 = vmatpush.msra.mxu1 %v111_v2 }
   0xa   :  { %131 = vmatpush.msra.mxu1 %v110_v4 }
   0xb   :  { %v74_v1 = vld [vmem:[%s2083_s1 + $0x18] sm:$0xff]  ;;  %v73_v3 = vld [vmem:[%s2083_s1 + $0x10] sm:$0xff]  ;;  %v72_v5 = vld [vmem:[%s2083_s1 + $0x8] sm:$0xff] }
   0xc   :  { %98 = vmatpush.msra.mxu0 %v74_v1  ;;  %v1652_v6 = vld [vmem:[%s2084_s0] sm:$0xff]  ;;  %132 = vmatpush.msra.mxu1 %v109_v7  ;;  %v1669_v11 = vld [vmem:[%s2084_s0 + $0x8] sm:$0xff] }
   0xd   :  { %v65_v8 = vld [vmem:[%s2085_s2] sm:$0xff]  ;;  %v66_v12 = vld [vmem:[%s2085_s2 + $0x8] sm:$0xff] }
   0xe   :  { %99 = vmatpush.msra.mxu0 %v73_v3  ;;  %v71_v9 = vld [vmem:[%s2083_s1] sm:$0xff]  ;;  %v1664_v10 = vadd.f32 %v65_v8, %v1652_v6 }
  0x10   :  { %100 = vmatpush.msra.mxu0 %v72_v5  ;;  %1328 = vmatmul.msk.f32.vlgmr.msra.gmra.mxu1 %vm79_vm0, %v1664_v10 }
  0x12   :  { %101 = vmatpush.msra.mxu0 %v71_v9 }
  0x13   :  { %1326 = vmatmul.msk.f32.vlgmr.msra.gmra.mxu0 %vm79_vm0, %v1664_v10 }
  0x14   :  { %24 = vsyncpa [#allocation3], 0  ;;  %v1679_v13 = vadd.f32 %v66_v12, %v1669_v11  ;;  %v1438_v14 = vld [vmem:[%s2063_s8] ss:$0 sm:$0xff]  ;;  %vm185_vm1 = vcmask 64512   ;;  %v143_v26 = vld [vmem:[%s2060_s5 + $0x18] sm:$0xff] }
  0x15   :  { %v1439_v15 = vld [vmem:[%s2062_s7] ss:$0 sm:$0xff]  ;;  %v142_v27 = vld [vmem:[%s2060_s5 + $0x10] sm:$0xff]  ;;  %166 = vmatpush.msra.mxu2 %v143_v26  ;;  %v141_v28 = vld [vmem:[%s2060_s5 + $0x8] sm:$0xff]  ;;  %s2086_s28 = sld [smem:[#allocation7_spill]]  ;;  %vm1218_vm9 = vcmask 523264  }
  0x16   :  { %v140_v29 = vld [vmem:[%s2060_s5] sm:$0xff]  ;;  %v1348_v38 = vld [vmem:[%s2059_s4 + $0x38] sm:$0xff]  ;;  %v1347_v39 = vld [vmem:[%s2059_s4 + $0x30] sm:$0xff]  ;;  %s1314_s22 = sshll.u32 %s2074_s19, 4  ;;  %s1530_s2 = smov 8   ;;  %s1315_s22 = int_to_ptr.hbm [resolvable:$true] %s1314_s22 }
  0x17   :  { %167 = vmatpush.msra.mxu2 %v142_v27  ;;  %v1346_v40 = vld [vmem:[%s2059_s4 + $0x28] sm:$0xff]  ;;  %v1345_v41 = vld [vmem:[%s2059_s4 + $0x20] sm:$0xff]  ;;  %v1341_v42 = vld [vmem:[%s2083_s1 + $0x38] sm:$0xff] }
  0x18   :  { %1329 = vmatmul.msk.f32.gmra.mxu1 %vm79_vm0, %v1679_v13  ;;  %v1340_v43 = vld [vmem:[%s2083_s1 + $0x30] sm:$0xff]  ;;  %v1339_v44 = vld [vmem:[%s2083_s1 + $0x28] sm:$0xff]  ;;  %v1338_v45 = vld [vmem:[%s2083_s1 + $0x20] sm:$0xff] }
  0x19   :  { %168 = vmatpush.msra.mxu2 %v141_v28  ;;  %329 = vmatpush.msrb.mxu1 %v1341_v42  ;;  %v1442_v56 = vld [vmem:[%s2064_s9] ss:$0 sm:$0xff]  ;;  %v1443_v61 = vld [vmem:[%s2063_s8 + $0x1] ss:$0 sm:$0xff] }
  0x1a   :  { %v1444_v7 = vld [vmem:[%s2062_s7 + $0x1] ss:$0 sm:$0xff] }
  0x1b   :  { %1327 = vmatmul.msk.f32.gmra.mxu0 %vm79_vm0, %v1679_v13  ;;  %169 = vmatpush.msra.mxu2 %v140_v29  ;;  %v1714_v30 = vld [vmem:[%s2086_s28] ss:$0 sm:$0xff]  ;;  %v1721_v34 = vld [vmem:[%s2086_s28 + $0x1] ss:$0 sm:$0xff] }
  0x1c   :  { %1330 = vmatmul.msk.f32.vlgmr.msra.gmra.mxu2 %vm79_vm0, %v1652_v6  ;;  %330 = vmatpush.msrb.mxu1 %v1340_v43 }
  0x1d   :  { %362 = vmatpush.msrb.mxu2 %v1348_v38 }
  0x1e   :  { %331 = vmatpush.msrb.mxu1 %v1339_v44  ;;  %v1445_v44 = vld [vmem:[%s2064_s9 + $0x1] ss:$0 sm:$0xff] }
  0x1f   :  { %363 = vmatpush.msrb.mxu2 %v1347_v39 }
  0x20   :  { %332 = vmatpush.msrb.mxu1 %v1338_v45 }
  0x21   :  { %364 = vmatpush.msrb.mxu2 %v1346_v40  ;;  %1343 = vmatmul.msk.f32.vlgmr.msrb.gmra.mxu1 %vm79_vm0, %v1664_v10 }
  0x23   :  { %365 = vmatpush.msrb.mxu2 %v1345_v41 }
  0x24   :  { %1331 = vmatmul.msk.f32.gmra.mxu2 %vm79_vm0, %v1669_v11 }
  0x29   :  { %1344 = vmatmul.msk.f32.gmra.mxu1 %vm79_vm0, %v1679_v13 }
  0x2c   :  { %1350 = vmatmul.msk.f32.vlgmr.msrb.gmra.mxu2 %vm79_vm0, %v1664_v10 }
  0x34   :  { %1351 = vmatmul.msk.f32.gmra.mxu2 %vm79_vm0, %v1679_v13 }
  0x8d   :  { %v134_v16 = vpop.f32.mrf.mxu1 }
  0x8e   :  { %v135_v18 = vadd.f32 %v1438_v14, %v134_v16 }
  0x90   :  { %v103_v17 = vpop.f32.mrf.mxu0  ;;  %1332 = vmatpush.xpose.msk.msra.mxu3 %vm185_vm1, %v135_v18 }
  0x91   :  { %v104_v19 = vadd.f32 %v1439_v15, %v103_v17 }
  0x93   :  { %v177_v20 = vmul.f32 0.35355338, %v104_v19  ;;  %v306_v19 = vld [vmem:[%s2061_s6] sm:$0xff] }
  0x95   :  { %1333 = vmatmul.msk.f32.vlgmr.msra.gmra.mxu3 %vm185_vm1, %v177_v20  ;;  %v137_v21 = vpop.f32.mrf.mxu1  ;;  %v1355_v20 = vld [vmem:[%s2060_s5 + $0x38] sm:$0xff] }
  0x96   :  { %v138_v23 = vadd.f32 %v1438_v14, %v137_v21  ;;  %v1354_v21 = vld [vmem:[%s2060_s5 + $0x30] sm:$0xff] }
  0x98   :  { %v106_v22 = vpop.f32.mrf.mxu0  ;;  %1334 = vmatpush.xpose.msk.msrb.mxu3 %vm185_vm1, %v138_v23 }
  0x99   :  { %v107_v24 = vadd.f32 %v1439_v15, %v106_v22 }
  0x9b   :  { %v178_v25 = vmul.f32 0.35355338, %v107_v24 }
  0x9d   :  { %1335 = vmatmul.msk.f32.vlgmr.msrb.gmra.mxu3 %vm185_vm1, %v178_v25 }
  0x9e   :  { %v334_v5 = vpop.f32.mrf.mxu1 }
  0x9f   :  { %v171_v57 = vpop.f32.mrf.mxu2  ;;  %v335_v14 = vadd.f32 %v1444_v7, %v334_v5 }
  0xa0   :  { %v172_v58 = vadd.f32 %v1442_v56, %v171_v57 }
  0xa1   :  { %v406_v15 = vmul.f32 0.35355338, %v335_v14 }
  0xa2   :  { %278 = vmatpush.msra.mxu3 %v172_v58 }
  0xa4   :  { %395 = vmatpush.msrb.mxu3 %v1355_v20 }
  0xa6   :  { %v337_v16 = vpop.f32.mrf.mxu1  ;;  %396 = vmatpush.msrb.mxu3 %v1354_v21  ;;  %v1385_v21 = vld [vmem:[%s2060_s5 + $0x48] sm:$0xff] }
  0xa7   :  { %v174_v59 = vpop.f32.mrf.mxu2  ;;  %v338_v17 = vadd.f32 %v1444_v7, %v337_v16 }
  0xa8   :  { %v175_v60 = vadd.f32 %v1442_v56, %v174_v59  ;;  %v1370_v56 = vld [vmem:[%s2083_s1 + $0x40] sm:$0xff] }
  0xa9   :  { %v407_v18 = vmul.f32 0.35355338, %v338_v17 }
  0xaa   :  { %301 = vmatpush.msrb.mxu0 %v175_v60 }
  0xaf   :  { %v367_v62 = vpop.f32.mrf.mxu2 }
  0xb0   :  { %v368_v63 = vadd.f32 %v1443_v61, %v367_v62 }
  0xb2   :  { %1359 = vmatpush.xpose.msk.msra.mxu0 %vm185_vm1, %v368_v63  ;;  %v1365_v63 = vld [vmem:[%s2061_s6 + $0x8] sm:$0xff] }
  0xb7   :  { %v370_v4 = vpop.f32.mrf.mxu2 }
  0xb8   :  { %v371_v9 = vadd.f32 %v1443_v61, %v370_v4 }
 0x118   :  { %v209_v31 = vpop.f32.mrf.mxu3 }
 0x119   :  { %v210_v32 = vadd.f32 %v1714_v30, %v209_v31  ;;  %v1353_v31 = vld [vmem:[%s2060_s5 + $0x28] sm:$0xff] }
 0x11a   :  { %397 = vmatpush.msrb.mxu3 %v1353_v31 }
 0x11b   :  { %v238_v33 = vsel %vm185_vm1, %v210_v32, -inf }
 0x11c   :  { %239 = vmax.xlane.f32.xlu1 %v238_v33 }
 0x120   :  { %v235_v35 = vpop.f32.mrf.mxu3 }
 0x121   :  { %v236_v36 = vadd.f32 %v1721_v34, %v235_v35 }
 0x123   :  { %v241_v37 = vsel %vm185_vm1, %v236_v36, -inf }
 0x124   :  { %242 = vmax.xlane.f32.xlu0 %v241_v37 }
 0x18f   :  { %v240_v46 = vpop.xlane.xlu1 %239 }
 0x190   :  { %v244_v47 = vsub.f32 %v210_v32, %v240_v46  ;;  %v1352_v32 = vld [vmem:[%s2060_s5 + $0x20] sm:$0xff] }
 0x191   :  { %398 = vmatpush.msrb.mxu3 %v1352_v32 }
 0x192   :  { %v246_v48 = vmul.f32 1.442695, %v244_v47 }
 0x194   :  { %1459 = vpow2.f32 %v246_v48 }
 0x197   :  { %v243_v49 = vpop.xlane.xlu0 %242 }
 0x198   :  { %v245_v50 = vsub.f32 %v236_v36, %v243_v49  ;;  %v1380_v49 = vld [vmem:[%s2059_s4 + $0x58] sm:$0xff] }
 0x19a   :  { %v1460_v51 = vpop.eup %1459  ;;  %v248_v52 = vmul.f32 1.442695, %v245_v50  ;;  %v1379_v50 = vld [vmem:[%s2059_s4 + $0x50] sm:$0xff] }
 0x19b   :  { %v250_v53 = vsel %vm185_vm1, %v1460_v51, 0.0 }
 0x19c   :  { %1461 = vpow2.f32 %v248_v52  ;;  %251 = vadd.xlane.f32.xlu1 %v250_v53  ;;  %v1377_v52 = vld [vmem:[%s2059_s4 + $0x40] sm:$0xff]  ;;  %v1373_v53 = vld [vmem:[%s2083_s1 + $0x58] sm:$0xff] }
 0x1a2   :  { %v1462_v54 = vpop.eup %1461 }
 0x1a3   :  { %v253_v55 = vsel %vm185_vm1, %v1462_v54, 0.0 }
 0x1a4   :  { %254 = vadd.xlane.f32.xlu0 %v253_v55  ;;  %v1371_v55 = vld [vmem:[%s2083_s1 + $0x48] sm:$0xff] }
 0x20f   :  { %v252_v0 = vpop.xlane.xlu1 %251 }
 0x210   :  { %1463 = vrcp.f32 %v252_v0 }
 0x216   :  { %v1464_v1 = vpop.eup %1463 }
 0x217   :  { %v258_v2 = vmul.f32 %v1464_v1, %v1460_v51  ;;  %v255_v3 = vpop.xlane.xlu0 %254  ;;  %v1378_v51 = vld [vmem:[%s2059_s4 + $0x48] sm:$0xff] }
 0x218   :  { %1465 = vrcp.f32 %v255_v3  ;;  %v1447_v3 = vld [vmem:[%s2062_s7 + $0x2] ss:$0 sm:$0xff] }
 0x219   :  { %1336 = vmatmul.msk.f32.vlgmr.msra.gmra.mxu3 %vm185_vm1, %v258_v2  ;;  %v1446_v2 = vld [vmem:[%s2063_s8 + $0x2] ss:$0 sm:$0xff] }
 0x21a   :  { %551 = vmatpush.msra.mxu3 %v1365_v63  ;;  %v1397_v63 = vld [vmem:[%s2061_s6 + $0x10] sm:$0xff] }
 0x21e   :  { %v1466_v8 = vpop.eup %1465 }
 0x21f   :  { %v259_v12 = vmul.f32 %v1466_v8, %v1462_v54  ;;  %v1372_v54 = vld [vmem:[%s2083_s1 + $0x50] sm:$0xff] }
 0x221   :  { %1337 = vmatmul.msk.f32.vlgmr.msrb.gmra.mxu0 %vm185_vm1, %v259_v12  ;;  %1357 = vmatmul.msk.f32.vlgmr.msrb.gmra.mxu3 %vm79_vm0, %v1652_v6 }
 0x222   :  { %1361 = vmatpush.xpose.msk.msrb.mxu0 %vm185_vm1, %v371_v9 }
 0x229   :  { %1360 = vmatmul.msk.f32.vlgmr.msra.gmra.mxu0 %vm185_vm1, %v406_v15  ;;  %1358 = vmatmul.msk.f32.gmra.mxu3 %vm79_vm0, %v1669_v11 }
 0x22a   :  { %580 = vmatpush.msra.mxu0 %v306_v19  ;;  %v1386_v19 = vld [vmem:[%s2060_s5 + $0x50] sm:$0xff] }
 0x231   :  { %1362 = vmatmul.msk.f32.vlgmr.msrb.gmra.mxu0 %vm185_vm1, %v407_v18  ;;  %v1387_v18 = vld [vmem:[%s2060_s5 + $0x58] sm:$0xff] }
 0x232   :  { %676 = vmatpush.msrb.mxu3 %v1387_v18 }
 0x234   :  { %677 = vmatpush.msrb.mxu3 %v1386_v19 }
 0x236   :  { %678 = vmatpush.msrb.mxu3 %v1385_v21 }
 0x29c   :  { %v280_v22 = vpop.f32.mrf.mxu3 }
 0x29d   :  { %1368 = vmatmul.msk.f32.vlgmr.msra.gmra.mxu0 %vm185_vm1, %v280_v22  ;;  %v1384_v22 = vld [vmem:[%s2060_s5 + $0x40] sm:$0xff] }
 0x29e   :  { %v303_v23 = vpop.f32.mrf.mxu0  ;;  %679 = vmatpush.msrb.mxu3 %v1384_v22 }
 0x2a4   :  { %v400_v45 = vpop.f32.mrf.mxu3 }
 0x2a5   :  { %1369 = vmatmul.msk.f32.gmra.mxu0 %vm185_vm1, %v303_v23  ;;  %v401_v46 = vadd.f32 %v1445_v44, %v400_v45 }
 0x2a6   :  { %v431_v24 = vpop.f32.mrf.mxu0 }
 0x2a7   :  { %v432_v28 = vadd.f32 %v1714_v30, %v431_v24  ;;  %500 = vmatpush.msra.mxu1 %v401_v46 }
 0x2a9   :  { %v460_v29 = vsel %vm185_vm1, %v432_v28, -inf  ;;  %610 = vmatpush.msrb.mxu1 %v1373_v53  ;;  %v1401_v53 = vld [vmem:[%s2083_s1 + $0x68] sm:$0xff] }
 0x2ab   :  { %611 = vmatpush.msrb.mxu1 %v1372_v54 }
 0x2ac   :  { %v403_v47 = vpop.f32.mrf.mxu3 }
 0x2ad   :  { %v404_v48 = vadd.f32 %v1445_v44, %v403_v47  ;;  %612 = vmatpush.msrb.mxu1 %v1371_v55  ;;  %v1448_v44 = vld [vmem:[%s2064_s9 + $0x2] ss:$0 sm:$0xff]  ;;  %v1410_v47 = vld [vmem:[%s2059_s4 + $0x78] sm:$0xff] }
 0x2ae   :  { %v457_v25 = vpop.f32.mrf.mxu0  ;;  %v1407_v55 = vld [vmem:[%s2059_s4 + $0x60] sm:$0xff] }
 0x2af   :  { %v458_v26 = vadd.f32 %v1721_v34, %v457_v25  ;;  %523 = vmatpush.msra.mxu2 %v404_v48  ;;  %613 = vmatpush.msrb.mxu1 %v1370_v56  ;;  %v1403_v48 = vld [vmem:[%s2083_s1 + $0x78] sm:$0xff]  ;;  %v1400_v56 = vld [vmem:[%s2083_s1 + $0x60] sm:$0xff] }
 0x2b1   :  { %v463_v27 = vsel %vm185_vm1, %v458_v26, -inf  ;;  %643 = vmatpush.msrb.mxu2 %v1380_v49  ;;  %v1409_v49 = vld [vmem:[%s2059_s4 + $0x70] sm:$0xff] }
 0x2b2   :  { %464 = vmax.xlane.f32.xlu2 %v463_v27 }
 0x2b3   :  { %644 = vmatpush.msrb.mxu2 %v1379_v50  ;;  %v1402_v50 = vld [vmem:[%s2083_s1 + $0x70] sm:$0xff] }
 0x2b5   :  { %645 = vmatpush.msrb.mxu2 %v1378_v51  ;;  %v1408_v51 = vld [vmem:[%s2059_s4 + $0x68] sm:$0xff] }
 0x2b7   :  { %646 = vmatpush.msrb.mxu2 %v1377_v52 }
 0x2ba   :  { %461 = vmax.xlane.f32.xlu2 %v460_v29 }
 0x31a   :  { %v1859_v20 = vpop.f32.mrf.mxu0 }
 0x322   :  { %v1869_v23 = vpop.f32.mrf.mxu0 }
 0x325   :  { %v465_v33 = vpop.xlane.xlu2 %464 }
 0x326   :  { %v467_v35 = vsub.f32 %v458_v26, %v465_v33 }
 0x328   :  { %v470_v36 = vmul.f32 1.442695, %v467_v35 }
 0x32a   :  { %1467 = vpow2.f32 %v470_v36 }
 0x32d   :  { %v462_v37 = vpop.xlane.xlu2 %461 }
 0x32e   :  { %v466_v38 = vsub.f32 %v432_v28, %v462_v37 }
 0x330   :  { %v1468_v39 = vpop.eup %1467  ;;  %v468_v40 = vmul.f32 1.442695, %v466_v38 }
 0x331   :  { %v475_v41 = vsel %vm185_vm1, %v1468_v39, 0.0 }
 0x332   :  { %1469 = vpow2.f32 %v468_v40  ;;  %476 = vadd.xlane.f32.xlu0 %v475_v41 }
 0x338   :  { %v1470_v42 = vpop.eup %1469 }
 0x339   :  { %v472_v43 = vsel %vm185_vm1, %v1470_v42, 0.0 }
 0x33a   :  { %473 = vadd.xlane.f32.xlu1 %v472_v43 }
 0x3a5   :  { %v477_v57 = vpop.xlane.xlu0 %476 }
 0x3a6   :  { %1471 = vrcp.f32 %v477_v57 }
 0x3ac   :  { %v1472_v58 = vpop.eup %1471 }
 0x3ad   :  { %v481_v59 = vmul.f32 %v1472_v58, %v1468_v39  ;;  %v474_v60 = vpop.xlane.xlu1 %473 }
 0x3ae   :  { %1473 = vrcp.f32 %v474_v60 }
 0x3af   :  { %1364 = vmatmul.msk.f32.vlgmr.msra.gmra.mxu2 %vm185_vm1, %v481_v59 }
 0x3b4   :  { %v1474_v61 = vpop.eup %1473 }
 0x3b5   :  { %v480_v62 = vmul.f32 %v1474_v61, %v1470_v42 }
 0x3b7   :  { %1363 = vmatmul.msk.f32.vlgmr.msra.gmra.mxu1 %vm185_vm1, %v480_v62  ;;  %1382 = vmatmul.msk.f32.vlgmr.msrb.gmra.mxu2 %vm79_vm0, %v1664_v10 }
 0x3bf   :  { %1375 = vmatmul.msk.f32.vlgmr.msrb.gmra.mxu1 %vm79_vm0, %v1664_v10  ;;  %1383 = vmatmul.msk.f32.gmra.mxu2 %vm79_vm0, %v1679_v13 }
 0x3c7   :  { %1376 = vmatmul.msk.f32.gmra.mxu1 %vm79_vm0, %v1679_v13 }
 0x432   :  { %v525_v0 = vpop.f32.mrf.mxu2 }
 0x434   :  { %v502_v1 = vpop.f32.mrf.mxu1 }
 0x435   :  { %1366 = vmatmul.msk.f32.vlgmr.msra.gmra.mxu3 %vm185_vm1, %v502_v1 }
 0x436   :  { %897 = vmatpush.msra.mxu3 %v1410_v47 }
 0x438   :  { %898 = vmatpush.msra.mxu3 %v1409_v49 }
 0x43a   :  { %v648_v4 = vpop.f32.mrf.mxu2  ;;  %899 = vmatpush.msra.mxu3 %v1408_v51 }
 0x43b   :  { %v649_v5 = vadd.f32 %v1446_v2, %v648_v4 }
 0x43c   :  { %v615_v7 = vpop.f32.mrf.mxu1  ;;  %900 = vmatpush.msra.mxu3 %v1407_v55 }
 0x43d   :  { %v616_v8 = vadd.f32 %v1447_v3, %v615_v7  ;;  %1367 = vmatmul.msk.f32.gmra.mxu3 %vm185_vm1, %v525_v0  ;;  %1391 = vmatpush.xpose.msk.msrb.mxu0 %vm185_vm1, %v649_v5  ;;  %v1449_v0 = vld [vmem:[%s2063_s8 + $0x3] ss:$0 sm:$0xff] }
 0x43f   :  { %v687_v9 = vmul.f32 0.35355338, %v616_v8 }
 0x441   :  { %1392 = vmatmul.msk.f32.vlgmr.msrb.gmra.mxu0 %vm185_vm1, %v687_v9 }
 0x442   :  { %v651_v12 = vpop.f32.mrf.mxu2 }
 0x443   :  { %v652_v14 = vadd.f32 %v1446_v2, %v651_v12 }
 0x444   :  { %v618_v15 = vpop.f32.mrf.mxu1 }
 0x445   :  { %v619_v16 = vadd.f32 %v1447_v3, %v618_v15  ;;  %1393 = vmatpush.xpose.msk.msra.mxu1 %vm185_vm1, %v652_v14  ;;  %1389 = vmatmul.msk.f32.vlgmr.msrb.gmra.mxu3 %vm79_vm0, %v1652_v6 }
 0x447   :  { %v688_v17 = vmul.f32 0.35355338, %v619_v16 }
 0x449   :  { %1394 = vmatmul.msk.f32.vlgmr.msra.gmra.mxu1 %vm185_vm1, %v688_v17 }
 0x44a   :  { %832 = vmatpush.msrb.mxu1 %v1397_v63 }
 0x44d   :  { %1390 = vmatmul.msk.f32.gmra.mxu3 %vm79_vm0, %v1669_v11 }
 0x455   :  { %1412 = vmatmul.msk.f32.vlgmr.msra.gmra.mxu3 %vm79_vm0, %v1664_v10 }
 0x45d   :  { %1413 = vmatmul.msk.f32.gmra.mxu3 %vm79_vm0, %v1679_v13 }
 0x4b8   :  { %v553_v42 = vpop.f32.mrf.mxu3 }
 0x4b9   :  { %v583_v16 = vadd.f32 %v1859_v20, %v553_v42  ;;  %v1417_v20 = vld [vmem:[%s2060_s5 + $0x78] sm:$0xff]  ;;  %v1451_v42 = vld [vmem:[%s2064_s9 + $0x3] ss:$0 sm:$0xff] }
 0x4be   :  { %v712_v24 = vpop.f32.mrf.mxu0 }
 0x4bf   :  { %v713_v25 = vadd.f32 %v1714_v30, %v712_v24 }
 0x4c0   :  { %v1879_v43 = vpop.f32.mrf.mxu3 }
 0x4c1   :  { %v741_v26 = vsel %vm185_vm1, %v713_v25, -inf  ;;  %v586_v19 = vadd.f32 %v1869_v23, %v1879_v43  ;;  %v1416_v23 = vld [vmem:[%s2060_s5 + $0x70] sm:$0xff] }
 0x4c2   :  { %742 = vmax.xlane.f32.xlu2 %v741_v26 }
 0x4c6   :  { %v738_v27 = vpop.f32.mrf.mxu1 }
 0x4c7   :  { %v739_v28 = vadd.f32 %v1721_v34, %v738_v27 }
 0x4c8   :  { %v681_v45 = vpop.f32.mrf.mxu3 }
 0x4c9   :  { %v744_v29 = vsel %vm185_vm1, %v739_v28, -inf  ;;  %v682_v46 = vadd.f32 %v1448_v44, %v681_v45 }
 0x4ca   :  { %745 = vmax.xlane.f32.xlu0 %v744_v29 }
 0x4cb   :  { %781 = vmatpush.msra.mxu2 %v682_v46 }
 0x4cd   :  { %864 = vmatpush.msrb.mxu2 %v1403_v48 }
 0x4cf   :  { %865 = vmatpush.msrb.mxu2 %v1402_v50 }
 0x4d0   :  { %v684_v52 = vpop.f32.mrf.mxu3 }
 0x4d1   :  { %v685_v54 = vadd.f32 %v1448_v44, %v684_v52  ;;  %866 = vmatpush.msrb.mxu2 %v1401_v53  ;;  %v1427_v53 = vld [vmem:[%s2061_s6 + $0x18] sm:$0xff] }
 0x4d3   :  { %804 = vmatpush.msra.mxu0 %v685_v54  ;;  %867 = vmatpush.msrb.mxu2 %v1400_v56  ;;  %v1452_v56 = vld [vmem:[%s2065_s10] ss:$0 sm:$0xff] }
 0x4d5   :  { %930 = vmatpush.msrb.mxu0 %v1417_v20  ;;  %v1212_v20 = vld [vmem:[%s2070_s15 + $0x30] sm:$0xff] }
 0x4d7   :  { %931 = vmatpush.msrb.mxu0 %v1416_v23  ;;  %v1211_v23 = vld [vmem:[%s2070_s15 + $0x28] sm:$0xff] }
 0x4d8   :  { %v902_v1 = vpop.f32.mrf.mxu3 }
 0x4d9   :  { %v903_v2 = vadd.f32 %v1449_v0, %v902_v1 }
 0x4db   :  { %1421 = vmatpush.xpose.msk.msra.mxu1 %vm185_vm1, %v903_v2 }
 0x4e0   :  { %v905_v3 = vpop.f32.mrf.mxu3 }
 0x4e1   :  { %v906_v4 = vadd.f32 %v1449_v0, %v905_v3  ;;  %v1527_v3 = vmov 32.0  }
 0x535   :  { %v743_v31 = vpop.xlane.xlu2 %742 }
 0x536   :  { %v747_v32 = vsub.f32 %v713_v25, %v743_v31 }
 0x538   :  { %v749_v33 = vmul.f32 1.442695, %v747_v32 }
 0x53a   :  { %1475 = vpow2.f32 %v749_v33 }
 0x53d   :  { %v746_v35 = vpop.xlane.xlu0 %745 }
 0x53e   :  { %v748_v36 = vsub.f32 %v739_v28, %v746_v35 }
 0x540   :  { %v1476_v37 = vpop.eup %1475  ;;  %v751_v38 = vmul.f32 1.442695, %v748_v36 }
 0x541   :  { %v753_v39 = vsel %vm185_vm1, %v1476_v37, 0.0 }
 0x542   :  { %1477 = vpow2.f32 %v751_v38  ;;  %754 = vadd.xlane.f32.xlu1 %v753_v39 }
 0x548   :  { %v1478_v40 = vpop.eup %1477 }
 0x549   :  { %v756_v41 = vsel %vm185_vm1, %v1478_v40, 0.0 }
 0x54a   :  { %757 = vadd.xlane.f32.xlu2 %v756_v41 }
 0x5b5   :  { %v755_v57 = vpop.xlane.xlu1 %754 }
 0x5b6   :  { %1479 = vrcp.f32 %v755_v57 }
 0x5bc   :  { %v1480_v58 = vpop.eup %1479 }
 0x5bd   :  { %v761_v59 = vmul.f32 %v1480_v58, %v1476_v37  ;;  %v758_v60 = vpop.xlane.xlu2 %757 }
 0x5be   :  { %1481 = vrcp.f32 %v758_v60 }
 0x5bf   :  { %1395 = vmatmul.msk.f32.vlgmr.msra.gmra.mxu2 %vm185_vm1, %v761_v59 }
 0x5c0   :  { %1423 = vmatpush.xpose.msk.msra.mxu2 %vm185_vm1, %v906_v4 }
 0x5c4   :  { %v1482_v61 = vpop.eup %1481 }
 0x5c5   :  { %v762_v62 = vmul.f32 %v1482_v61, %v1478_v40 }
 0x5c7   :  { %1396 = vmatmul.msk.f32.vlgmr.msra.gmra.mxu0 %vm185_vm1, %v762_v62  ;;  %1405 = vmatmul.msk.f32.vlgmr.msrb.gmra.mxu2 %vm79_vm0, %v1664_v10 }
 0x5cf   :  { %1406 = vmatmul.msk.f32.gmra.mxu2 %vm79_vm0, %v1679_v13  ;;  %v1450_v13 = vld [vmem:[%s2062_s7 + $0x3] ss:$0 sm:$0xff] }
 0x642   :  { %v783_v10 = vpop.f32.mrf.mxu2 }
 0x643   :  { %1398 = vmatmul.msk.f32.vlgmr.msrb.gmra.mxu1 %vm185_vm1, %v783_v10 }
 0x644   :  { %v806_v5 = vpop.f32.mrf.mxu0  ;;  %1086 = vmatpush.msrb.mxu1 %v1427_v53 }
 0x64a   :  { %v869_v7 = vpop.f32.mrf.mxu2 }
 0x64b   :  { %1399 = vmatmul.msk.f32.gmra.mxu1 %vm185_vm1, %v806_v5  ;;  %v870_v8 = vadd.f32 %v1450_v13, %v869_v7 }
 0x64d   :  { %v941_v9 = vmul.f32 0.35355338, %v870_v8 }
 0x652   :  { %v872_v12 = vpop.f32.mrf.mxu2 }
 0x653   :  { %v873_v14 = vadd.f32 %v1450_v13, %v872_v12  ;;  %1422 = vmatmul.msk.f32.vlgmr.msra.gmra.mxu1 %vm185_vm1, %v941_v9 }
 0x655   :  { %v942_v15 = vmul.f32 0.35355338, %v873_v14 }
 0x657   :  { %1424 = vmatmul.msk.f32.vlgmr.msra.gmra.mxu2 %vm185_vm1, %v942_v15 }
 0x6c0   :  { %v834_v17 = vpop.f32.mrf.mxu1 }
 0x6c1   :  { %v840_v18 = vadd.f32 %v834_v17, %v583_v16 }
 0x6c8   :  { %v837_v21 = vpop.f32.mrf.mxu1 }
 0x6c9   :  { %v1936_v22 = vadd.f32 %v837_v21, %v586_v19  ;;  %v1170_v21 = vld [vmem:[%s2068_s13 + $0x18] sm:$0xff] }
 0x6ca   :  { %1193 = vmatpush.msrb.mxu2 %v1170_v21 }
 0x6d0   :  { %v966_v24 = vpop.f32.mrf.mxu1 }
 0x6d1   :  { %v967_v25 = vadd.f32 %v1714_v30, %v966_v24  ;;  %v1415_v30 = vld [vmem:[%s2060_s5 + $0x68] sm:$0xff] }
 0x6d2   :  { %932 = vmatpush.msrb.mxu0 %v1415_v30  ;;  %v1168_v24 = vld [vmem:[%s2068_s13 + $0x8] sm:$0xff] }
 0x6d3   :  { %v995_v26 = vsel %vm185_vm1, %v967_v25, -inf }
 0x6d4   :  { %996 = vmax.xlane.f32.xlu0 %v995_v26 }
 0x6da   :  { %v992_v27 = vpop.f32.mrf.mxu2 }
 0x6db   :  { %v993_v28 = vadd.f32 %v1721_v34, %v992_v27  ;;  %v1414_v34 = vld [vmem:[%s2060_s5 + $0x60] sm:$0xff] }
 0x6dc   :  { %933 = vmatpush.msrb.mxu0 %v1414_v34 }
 0x6dd   :  { %v998_v29 = vsel %vm185_vm1, %v993_v28, -inf  ;;  %1419 = vmatmul.msk.f32.vlgmr.msrb.gmra.mxu0 %vm79_vm0, %v1652_v6 }
 0x6de   :  { %999 = vmax.xlane.f32.xlu1 %v998_v29  ;;  %v1213_v29 = vld [vmem:[%s2070_s15 + $0x38] sm:$0xff] }
 0x6df   :  { %1233 = vmatpush.msrb.mxu3 %v1213_v29 }
 0x6e1   :  { %1234 = vmatpush.msrb.mxu3 %v1212_v20 }
 0x6e3   :  { %1235 = vmatpush.msrb.mxu3 %v1211_v23 }
 0x6e5   :  { %1420 = vmatmul.msk.f32.gmra.mxu0 %vm79_vm0, %v1669_v11 }
 0x747   :  { %v997_v31 = vpop.xlane.xlu0 %996 }
 0x748   :  { %v1001_v32 = vsub.f32 %v967_v25, %v997_v31  ;;  %v1167_v25 = vld [vmem:[%s2068_s13] sm:$0xff] }
 0x74a   :  { %v1003_v33 = vmul.f32 1.442695, %v1001_v32  ;;  %v1210_v32 = vld [vmem:[%s2070_s15 + $0x20] sm:$0xff] }
 0x74b   :  { %1236 = vmatpush.msrb.mxu3 %v1210_v32 }
 0x74c   :  { %1483 = vpow2.f32 %v1003_v33 }
 0x751   :  { %v1000_v35 = vpop.xlane.xlu1 %999 }
 0x752   :  { %v1484_v36 = vpop.eup %1483  ;;  %v1002_v37 = vsub.f32 %v993_v28, %v1000_v35 }
 0x753   :  { %v1007_v38 = vsel %vm185_vm1, %v1484_v36, 0.0 }
 0x754   :  { %v1005_v39 = vmul.f32 1.442695, %v1002_v37  ;;  %1008 = vadd.xlane.f32.xlu2 %v1007_v38 }
 0x756   :  { %1485 = vpow2.f32 %v1005_v39 }
 0x75a   :  { %v935_v43 = vpop.f32.mrf.mxu0 }
 0x75b   :  { %v936_v44 = vadd.f32 %v1451_v42, %v935_v43 }
 0x75c   :  { %v1486_v40 = vpop.eup %1485 }
 0x75d   :  { %v1010_v41 = vsel %vm185_vm1, %v1486_v40, 0.0  ;;  %1035 = vmatpush.msra.mxu0 %v936_v44 }
 0x75e   :  { %1011 = vadd.xlane.f32.xlu0 %v1010_v41 }
 0x762   :  { %v938_v45 = vpop.f32.mrf.mxu0 }
 0x763   :  { %v939_v46 = vadd.f32 %v1451_v42, %v938_v45  ;;  %v1453_v42 = vld [vmem:[%s2066_s11] ss:$0 sm:$0xff] }
 0x765   :  { %1058 = vmatpush.msrb.mxu0 %v939_v46  ;;  %v1454_v46 = vld [vmem:[%s2067_s12] ss:$0 sm:$0xff] }
 0x7c7   :  { %v1009_v47 = vpop.xlane.xlu2 %1008 }
 0x7c8   :  { %1487 = vrcp.f32 %v1009_v47 }
 0x7ce   :  { %v1488_v48 = vpop.eup %1487 }
 0x7cf   :  { %v1015_v49 = vmul.f32 %v1488_v48, %v1484_v36  ;;  %v1209_v36 = vld [vmem:[%s2070_s15 + $0x18] sm:$0xff] }
 0x7d0   :  { %1237 = vmatpush.msrb.mxu3 %v1209_v36  ;;  %v1457_v36 = vld [vmem:[%s2072_s17] ss:$0 sm:$0xff]  ;;  %s1528_s17 = smov [#allocation2]  }
 0x7d1   :  { %1425 = vmatmul.msk.f32.vlgmr.msra.gmra.mxu0 %vm185_vm1, %v1015_v49  ;;  %v1012_v50 = vpop.xlane.xlu0 %1011  ;;  %s1312_s7 = sshll.u32 %s1528_s17, 4  ;;  %s1313_s7 = int_to_ptr.vmem [resolvable:$true] %s1312_s7 }
 0x7d2   :  { %1489 = vrcp.f32 %v1012_v50 }
 0x7d3   :  { %1491 = vrcp.f32 %v1527_v3  ;;  %v1456_v3 = vld [vmem:[%s2071_s16] ss:$0 sm:$0xff] }
 0x7d8   :  { %v1490_v51 = vpop.eup %1489 }
 0x7d9   :  { %v1016_v52 = vmul.f32 %v1490_v51, %v1486_v40  ;;  %v1492_v4 = vpop.eup %1491 }
 0x7da   :  { %v1113_v10 = vmul.f32 32.0, %v1492_v4  ;;  %vm1117_vm2 = vweird.f32 %v1492_v4 }
 0x7db   :  { %1426 = vmatmul.msk.f32.vlgmr.msrb.gmra.mxu0 %vm185_vm1, %v1016_v52 }
 0x7dc   :  { %v1114_v13 = vsub.f32 1.0, %v1113_v10 }
 0x7de   :  { %v1115_v5 = vmul.f32 %v1492_v4, %v1114_v13 }
 0x7e0   :  { %v1116_v7 = vadd.f32 %v1492_v4, %v1115_v5 }
 0x84e   :  { %v1037_v54 = vpop.f32.mrf.mxu0 }
 0x84f   :  { %1428 = vmatmul.msk.f32.vlgmr.msrb.gmra.mxu1 %vm185_vm1, %v1037_v54 }
 0x858   :  { %v1060_v55 = vpop.f32.mrf.mxu0 }
 0x859   :  { %1429 = vmatmul.msk.f32.gmra.mxu1 %vm185_vm1, %v1060_v55 }
 0x8cc   :  { %v1088_v57 = vpop.f32.mrf.mxu1 }
 0x8cd   :  { %v1094_v58 = vadd.f32 %v1088_v57, %v840_v18  ;;  %v1208_v57 = vld [vmem:[%s2070_s15 + $0x10] sm:$0xff] }
 0x8ce   :  { %1238 = vmatpush.msrb.mxu3 %v1208_v57 }
 0x8cf   :  { %v1100_v59 = vadd.f32 %v1452_v56, %v1094_v58  ;;  %v1207_v58 = vld [vmem:[%s2070_s15 + $0x8] sm:$0xff] }
 0x8d0   :  { %1239 = vmatpush.msrb.mxu3 %v1207_v58 }
 0x8d1   :  { %v1102_v60 = vadd.f32 %v1100_v59, %v1652_v6  ;;  %v1978_v6 = vsel %vm1117_vm2, %v1492_v4, %v1116_v7  ;;  %v1206_v59 = vld [vmem:[%s2070_s15] sm:$0xff] }
 0x8d2   :  { %1240 = vmatpush.msrb.mxu3 %v1206_v59 }
 0x8d3   :  { %v1106_v61 = vsel %vm79_vm0, %v1102_v60, 0.0 }
 0x8d4   :  { %1107 = vadd.xlane.f32.xlu1 %v1106_v61 }
 0x8d6   :  { %v1091_v62 = vpop.f32.mrf.mxu1 }
 0x8d7   :  { %v1095_v63 = vadd.f32 %v1091_v62, %v1936_v22  ;;  %v1169_v22 = vld [vmem:[%s2068_s13 + $0x10] sm:$0xff] }
 0x8d8   :  { %1194 = vmatpush.msrb.mxu2 %v1169_v22 }
 0x8d9   :  { %v1101_v0 = vadd.f32 %v1452_v56, %v1095_v63 }
 0x8da   :  { %1195 = vmatpush.msrb.mxu2 %v1168_v24 }
 0x8db   :  { %v1103_v1 = vadd.f32 %v1101_v0, %v1669_v11 }
 0x8dc   :  { %1196 = vmatpush.msrb.mxu2 %v1167_v25 }
 0x8dd   :  { %v1109_v2 = vsel %vm79_vm0, %v1103_v1, 0.0 }
 0x8de   :  { %1110 = vadd.xlane.f32.xlu2 %v1109_v2 }
 0x947   :  { %v1108_v8 = vpop.xlane.xlu1 %1107 }
 0x948   :  { %v1119_v9 = vmul.f32 %v1978_v6, %v1108_v8 }
 0x94a   :  { %v1121_v12 = vsub.f32 %v1102_v60, %v1119_v9  ;;  %v1455_v60 = vld [vmem:[%s2069_s14] ss:$0 sm:$0xff] }
 0x94c   :  { %v1123_v14 = vmul.f32 %v1121_v12, %v1121_v12 }
 0x94e   :  { %v1125_v11 = vsel %vm79_vm0, %v1123_v14, 0.0 }
 0x94f   :  { %1126 = vadd.xlane.f32.xlu0 %v1125_v11 }
 0x951   :  { %v1111_v15 = vpop.xlane.xlu2 %1110 }
 0x952   :  { %v1120_v16 = vmul.f32 %v1978_v6, %v1111_v15 }
 0x954   :  { %v1122_v17 = vsub.f32 %v1103_v1, %v1120_v16 }
 0x956   :  { %v1124_v18 = vmul.f32 %v1122_v17, %v1122_v17 }
 0x958   :  { %v1128_v19 = vsel %vm79_vm0, %v1124_v18, 0.0 }
 0x959   :  { %1129 = vadd.xlane.f32.xlu1 %v1128_v19 }
 0x9c2   :  { %v1127_v26 = vpop.xlane.xlu0 %1126 }
 0x9c3   :  { %v1131_v27 = vmul.f32 %v1127_v26, %v1978_v6 }
 0x9c5   :  { %v1133_v28 = vadd.f32 1e-05, %v1131_v27 }
 0x9c7   :  { %1493 = vrsqrt.f32 %v1133_v28  ;;  %vm1141_vm4 = vweird.f32 %v1133_v28 }
 0x9cc   :  { %v1130_v30 = vpop.xlane.xlu1 %1129 }
 0x9cd   :  { %v1494_v34 = vpop.eup %1493  ;;  %v1132_v31 = vmul.f32 %v1130_v30, %v1978_v6 }
 0x9ce   :  { %v1136_v33 = vmul.f32 %v1494_v34, %v1133_v28  ;;  %vm1142_vm3 = vweird.f32 %v1494_v34 }
 0x9cf   :  { %v1134_v35 = vadd.f32 1e-05, %v1132_v31  ;;  %vm1143_vm5 = vmor %vm1141_vm4, %vm1142_vm3 }
 0x9d0   :  { %v1137_v37 = vmul.f32 %v1494_v34, %v1136_v33 }
 0x9d1   :  { %1495 = vrsqrt.f32 %v1134_v35  ;;  %vm1151_vm7 = vweird.f32 %v1134_v35 }
 0x9d2   :  { %v1138_v38 = vmul.f32 0.5, %v1137_v37 }
 0x9d4   :  { %v1139_v39 = vsub.f32 1.5, %v1138_v38 }
 0x9d6   :  { %v1140_v40 = vmul.f32 %v1494_v34, %v1139_v39 }
 0x9d7   :  { %v1496_v41 = vpop.eup %1495 }
 0x9d8   :  { %v1144_v43 = vsel %vm1143_vm5, %v1494_v34, %v1140_v40  ;;  %v1146_v44 = vmul.f32 %v1496_v41, %v1134_v35  ;;  %vm1152_vm6 = vweird.f32 %v1496_v41 }
 0x9d9   :  { %v1155_v45 = vmul.f32 %v1144_v43, %v1121_v12  ;;  %vm1153_vm8 = vmor %vm1151_vm7, %vm1152_vm6 }
 0x9da   :  { %v1147_v47 = vmul.f32 %v1496_v41, %v1146_v44 }
 0x9db   :  { %v1160_v48 = vmul.f32 %v1453_v42, %v1155_v45 }
 0x9dc   :  { %v1148_v49 = vmul.f32 0.5, %v1147_v47 }
 0x9dd   :  { %v1165_v50 = vadd.f32 %v1454_v46, %v1160_v48 }
 0x9de   :  { %v1149_v51 = vsub.f32 1.5, %v1148_v49 }
 0x9df   :  { %1430 = vmatmul.msk.f32.vlgmr.msrb.gmra.mxu2 %vm79_vm0, %v1165_v50 }
 0x9e0   :  { %v1150_v52 = vmul.f32 %v1496_v41, %v1149_v51 }
 0x9e2   :  { %v1154_v53 = vsel %vm1153_vm8, %v1496_v41, %v1150_v52 }
 0x9e3   :  { %v1156_v54 = vmul.f32 %v1154_v53, %v1122_v17 }
 0x9e5   :  { %v1161_v55 = vmul.f32 %v1453_v42, %v1156_v54 }
 0x9e7   :  { %v1166_v56 = vadd.f32 %v1454_v46, %v1161_v55 }
 0x9e9   :  { %1431 = vmatmul.msk.f32.gmra.mxu2 %vm79_vm0, %v1166_v56 }
 0xa62   :  { %v1198_v61 = vpop.f32.mrf.mxu2 }
 0xa63   :  { %v1199_v62 = vadd.f32 %v1455_v60, %v1198_v61 }
 0xa65   :  { %v1204_v63 = vmax.f32 %v1199_v62, 0.0 }
 0xa67   :  { %1432 = vmatmul.msk.f32.vlgmr.msrb.gmra.mxu3 %vm1218_vm9, %v1204_v63 }
 0xa6c   :  { %v1201_v0 = vpop.f32.mrf.mxu2 }
 0xa6d   :  { %v1202_v1 = vadd.f32 %v1455_v60, %v1201_v0 }
 0xa6f   :  { %v1205_v2 = vmax.f32 %v1202_v1, 0.0 }
 0xa71   :  { %1433 = vmatmul.msk.f32.gmra.mxu3 %vm1218_vm9, %v1205_v2 }
 0xaea   :  { %v1242_v4 = vpop.f32.mrf.mxu3 }
 0xaeb   :  { %v1243_v10 = vadd.f32 %v1456_v3, %v1242_v4 }
 0xaed   :  { %v1248_v13 = vadd.f32 %v1243_v10, %v1165_v50 }
 0xaef   :  { %v1252_v5 = vsel %vm79_vm0, %v1248_v13, 0.0 }
 0xaf0   :  { %1253 = vadd.xlane.f32.xlu2 %v1252_v5 }
 0xaf4   :  { %v1245_v7 = vpop.f32.mrf.mxu3 }
 0xaf5   :  { %v1246_v8 = vadd.f32 %v1456_v3, %v1245_v7 }
 0xaf7   :  { %v1249_v9 = vadd.f32 %v1246_v8, %v1166_v56 }
 0xaf9   :  { %v1255_v12 = vsel %vm79_vm0, %v1249_v9, 0.0 }
 0xafa   :  { %1256 = vadd.xlane.f32.xlu0 %v1255_v12 }
 0xb63   :  { %v1254_v14 = vpop.xlane.xlu2 %1253 }
 0xb64   :  { %v1258_v11 = vmul.f32 %v1254_v14, %v1978_v6 }
 0xb66   :  { %v1260_v15 = vsub.f32 %v1248_v13, %v1258_v11 }
 0xb68   :  { %v1262_v16 = vmul.f32 %v1260_v15, %v1260_v15 }
 0xb6a   :  { %v1264_v17 = vsel %vm79_vm0, %v1262_v16, 0.0 }
 0xb6b   :  { %1265 = vadd.xlane.f32.xlu1 %v1264_v17 }
 0xb6d   :  { %v1257_v18 = vpop.xlane.xlu0 %1256 }
 0xb6e   :  { %v1259_v19 = vmul.f32 %v1257_v18, %v1978_v6 }
 0xb70   :  { %v1261_v21 = vsub.f32 %v1249_v9, %v1259_v19 }
 0xb72   :  { %v1263_v22 = vmul.f32 %v1261_v21, %v1261_v21 }
 0xb74   :  { %v1267_v24 = vsel %vm79_vm0, %v1263_v22, 0.0 }
 0xb75   :  { %1268 = vadd.xlane.f32.xlu2 %v1267_v24 }
 0xbde   :  { %v1266_v25 = vpop.xlane.xlu1 %1265 }
 0xbdf   :  { %v1270_v26 = vmul.f32 %v1266_v25, %v1978_v6 }
 0xbe1   :  { %v1272_v27 = vadd.f32 1e-05, %v1270_v26 }
 0xbe3   :  { %1497 = vrsqrt.f32 %v1272_v27  ;;  %vm1280_vm11 = vweird.f32 %v1272_v27 }
 0xbe8   :  { %v1269_v28 = vpop.xlane.xlu2 %1268 }
 0xbe9   :  { %v1498_v29 = vpop.eup %1497  ;;  %v1271_v20 = vmul.f32 %v1269_v28, %v1978_v6  ;;  %v1458_v6 = vld [vmem:[%s2073_s18] ss:$0 sm:$0xff]  ;;  %s1529_s18 = smov 128  }
 0xbea   :  { %v1275_v23 = vmul.f32 %v1498_v29, %v1272_v27  ;;  %vm1281_vm10 = vweird.f32 %v1498_v29 }
 0xbeb   :  { %v1273_v30 = vadd.f32 1e-05, %v1271_v20  ;;  %vm1282_vm12 = vmor %vm1280_vm11, %vm1281_vm10 }
 0xbec   :  { %v1276_v34 = vmul.f32 %v1498_v29, %v1275_v23 }
 0xbed   :  { %1499 = vrsqrt.f32 %v1273_v30  ;;  %vm1290_vm14 = vweird.f32 %v1273_v30 }
 0xbee   :  { %v1277_v31 = vmul.f32 0.5, %v1276_v34 }
 0xbf0   :  { %v1278_v32 = vsub.f32 1.5, %v1277_v31 }
 0xbf2   :  { %v1279_v33 = vmul.f32 %v1498_v29, %v1278_v32 }
 0xbf3   :  { %v1500_v35 = vpop.eup %1499 }
 0xbf4   :  { %v1283_v37 = vsel %vm1282_vm12, %v1498_v29, %v1279_v33  ;;  %v1285_v38 = vmul.f32 %v1500_v35, %v1273_v30  ;;  %vm1291_vm13 = vweird.f32 %v1500_v35 }
 0xbf5   :  { %v1294_v39 = vmul.f32 %v1283_v37, %v1260_v15  ;;  %vm1292_vm15 = vmor %vm1290_vm14, %vm1291_vm13 }
 0xbf6   :  { %v1286_v40 = vmul.f32 %v1500_v35, %v1285_v38 }
 0xbf7   :  { %v1299_v41 = vmul.f32 %v1457_v36, %v1294_v39 }
 0xbf8   :  { %v1287_v42 = vmul.f32 0.5, %v1286_v40 }
 0xbf9   :  { %v1304_v43 = vadd.f32 %v1458_v6, %v1299_v41 }
 0xbfa   :  { %v1288_v44 = vsub.f32 1.5, %v1287_v42 }
 0xbfb   :  { %1306 = vst.msk [vmem:[#allocation2] sm:$0xff] %vm79_vm0, %v1304_v43 }
 0xbfc   :  { %v1289_v45 = vmul.f32 %v1500_v35, %v1288_v44 }
 0xbfe   :  { %v1293_v46 = vsel %vm1292_vm15, %v1500_v35, %v1289_v45 }
 0xbff   :  { %v1295_v47 = vmul.f32 %v1293_v46, %v1261_v21 }
 0xc01   :  { %v1300_v48 = vmul.f32 %v1457_v36, %v1295_v47 }
 0xc03   :  { %v1305_v49 = vadd.f32 %v1458_v6, %v1300_v48 }
 0xc05   :  { %1307 = vst.msk [vmem:[#allocation2 + $0x8] sm:$0xff] %vm79_vm0, %v1305_v49 }
 0xc06   :  { %1320 = dma.vmem_to_hbm [thread:$0]  %s1313_s7, 256, %s1315_s22, [#allocation3], %s1529_s18, %s1529_s18, %s1530_s2  }
 0xc07   :  { %1525 = dma.done.wait [#allocation3], 256  }
 0xc08   :  { %1526 = vsyncadd [#allocation3], 4294967040 }
 0xc09   :  { %1325 = vsyncpa [#allocation3], 1 }

</bundles_post_ra>
